<compile_context>
chip_gen: v7x
topology: tpu7x:2x2x1
jax: 0.10.0
libtpu: 0.0.40
codegen_flags: <defaults>
</compile_context>

<pallas_src>
import functools

import jax
import jax.numpy as jnp
from jax import lax
from jax.experimental import pallas as pl
from jax.experimental.pallas import tpu as pltpu

NEG_SLOPE = 0.2  # leaky-relu slope of the synthetic discriminator


def _wgan_gp_kernel(*refs, n, m_half, gp_param, drift_param, compute_gp):
    if compute_gp:
        (x_ref, w1_ref, b1_ref, w2_ref, w_ref, b2_ref,
         out_ref, h_acc, g_acc) = refs
    else:
        (x_ref, w1_ref, b1_ref, w2_ref, b2_ref, out_ref, h_acc) = refs
        w_ref = g_acc = None

    k = pl.program_id(0)
    nsteps = pl.num_programs(0)

    @pl.when(k == 0)
    def _init():
        h_acc[...] = jnp.zeros_like(h_acc)
        if compute_gp:
            g_acc[...] = jnp.zeros_like(g_acc)

    x = x_ref[...]            # [M_pad, tile_f] bf16 (fakes rows [0,n), reals rows [m_half, m_half+n))
    w1_blk = w1_ref[...]      # [tile_f, H]   bf16

    # Single fused matmul over the stacked fake/real rows; f32 accumulation.
    h_acc[...] += jnp.dot(x, w1_blk, preferred_element_type=jnp.float32)

    if compute_gp:
        # Gram accumulation G += W1_blk^T @ W1_blk  (contraction over the
        # streamed F dimension) -> the [N, F] input-gradient is never formed.
        g_acc[...] += lax.dot_general(
            w1_blk, w1_blk,
            dimension_numbers=(((0,), (0,)), ((), ())),
            preferred_element_type=jnp.float32)

    @pl.when(k == nsteps - 1)
    def _finalize():
        b1 = b1_ref[...]      # [1, H] f32
        w2 = w2_ref[...]      # [1, H] f32
        b2 = b2_ref[0]        # scalar (SMEM)

        h = h_acc[...] + b1                                    # [M_pad, H]
        a = jnp.where(h > 0, h, NEG_SLOPE * h)
        outs = jnp.sum(a * w2, axis=1, keepdims=True) + b2     # [M_pad, 1]

        ridx = lax.broadcasted_iota(jnp.int32, (m_half, 1), 0)
        valid = ridx < n                                       # mask out pad rows

        fo = outs[0:m_half]                # sublane-aligned slices (m_half % 8 == 0)
        ro = outs[m_half:2 * m_half]
        sum_f = jnp.sum(jnp.where(valid, fo, 0.0))
        sum_r = jnp.sum(jnp.where(valid, ro, 0.0))
        sum_r2 = jnp.sum(jnp.where(valid, ro * ro, 0.0))

        out_ref[0] = (sum_f - sum_r) / n                       # wgan loss
        out_ref[2] = jnp.float32(drift_param) * (sum_r2 / n)   # drift loss

        if compute_gp:
            w = w_ref[...]                                     # [m_half, 1] f32
            # Linearity of layer 1: interp pre-activation from fake/real rows.
            h_i = (1.0 - w) * h[0:m_half] + w * h[m_half:2 * m_half]
            grad_h = w2 * jnp.where(h_i > 0, 1.0, NEG_SLOPE)   # [m_half, H]
            # ||grad_h @ W1^T||^2 == diag(grad_h G grad_h^T)
            ghg = jnp.dot(grad_h, g_acc[...],
                          preferred_element_type=jnp.float32)  # [m_half, H]
            sq = jnp.maximum(jnp.sum(ghg * grad_h, axis=1, keepdims=True), 0.0)
            gnorm = jnp.sqrt(sq)
            gp_sum = jnp.sum(jnp.where(valid, (gnorm - 1.0) ** 2, 0.0))
            out_ref[1] = jnp.float32(gp_param) * (gp_sum / n)
        else:
            out_ref[1] = jnp.float32(0.0)


def _choose_f_tiling(feat):
    """Return (tile_f, f_pad): lane-aligned tile width and padded feature count."""
    align = 256
    f_aligned = -(-feat // align) * align
    if f_aligned <= 4096:
        return f_aligned, f_aligned          # whole W1 in one (pipelined) block
    tile = 2048                              # ~0.5 MiB bf16 per W1 block at H=128
    return tile, -(-feat // tile) * tile


def wgan_gp_discriminator_loss(fakes_nchw, reals_nchw, interp_w, params,
                               gp_param, drift_param):
    """Returns (wgan_loss, gp_loss, drift_loss), matching the PyTorch module."""
    W1, b1, w2, b2 = params
    n = fakes_nchw.shape[0]
    feat, hdim = W1.shape

    compute_gp = gp_param is not None
    compute_drift = drift_param is not None

    tile_f, f_pad = _choose_f_tiling(feat)
    grid = (f_pad // tile_f,)

    m_half = max(8, -(-n // 8) * 8)          # 8-aligned half (fakes / reals)
    m_pad = 2 * m_half                       # multiple of 16 -> bf16 packing ok

    # Pre-stacked, zero-padded bf16 input slab (one DMA stream, no in-kernel concat).
    f2d = fakes_nchw.reshape(n, -1).astype(jnp.bfloat16)
    r2d = reals_nchw.reshape(n, -1).astype(jnp.bfloat16)
    x = jnp.zeros((m_pad, f_pad), jnp.bfloat16)
    x = x.at[0:n, 0:feat].set(f2d)
    x = x.at[m_half:m_half + n, 0:feat].set(r2d)

    w1 = W1.astype(jnp.bfloat16)
    if f_pad > feat:
        w1 = jnp.pad(w1, ((0, f_pad - feat), (0, 0)))

    b1v = jnp.asarray(b1, jnp.float32).reshape(1, hdim)
    w2v = jnp.asarray(w2, jnp.float32).reshape(1, hdim)
    b2_flat = jnp.asarray(b2, jnp.float32).reshape(-1)[:1]    # (1,) SMEM scalar

    smem = pltpu.MemorySpace.SMEM
    in_specs = [
        pl.BlockSpec((m_pad, tile_f), lambda k: (0, k)),      # stacked fakes+reals
        pl.BlockSpec((tile_f, hdim), lambda k: (k, 0)),       # W1 (streamed)
        pl.BlockSpec((1, hdim), lambda k: (0, 0)),            # b1
        pl.BlockSpec((1, hdim), lambda k: (0, 0)),            # w2
    ]
    args = [x, w1, b1v, w2v]
    scratch = [pltpu.VMEM((m_pad, hdim), jnp.float32)]        # h_acc

    if compute_gp:
        wvec = jnp.zeros((m_half, 1), jnp.float32)
        wvec = wvec.at[0:n, :].set(interp_w.reshape(n, 1).astype(jnp.float32))
        in_specs.append(pl.BlockSpec((m_half, 1), lambda k: (0, 0)))
        args.append(wvec)
        scratch.append(pltpu.VMEM((hdim, hdim), jnp.float32))  # Gram accumulator

    in_specs.append(pl.BlockSpec(memory_space=smem))           # b2 scalar
    args.append(b2_flat)

    kernel = functools.partial(
        _wgan_gp_kernel,
        n=n, m_half=m_half,
        gp_param=float(gp_param) if compute_gp else 0.0,
        drift_param=float(drift_param) if compute_drift else 0.0,
        compute_gp=compute_gp,
    )

    flops = 2 * m_pad * f_pad * hdim
    if compute_gp:
        flops += 2 * f_pad * hdim * hdim
    bytes_accessed = x.size * 2 + w1.size * 2 + 2 * hdim * 4 + 3 * 4

    out = pl.pallas_call(
        kernel,
        out_shape=jax.ShapeDtypeStruct((3,), jnp.float32),
        grid_spec=pltpu.PrefetchScalarGridSpec(
            num_scalar_prefetch=0,
            grid=grid,
            in_specs=in_specs,
            out_specs=pl.BlockSpec(memory_space=smem),
            scratch_shapes=scratch,
        ),
        compiler_params=pltpu.CompilerParams(
            dimension_semantics=("arbitrary",),
            vmem_limit_bytes=32 * 1024 * 1024,
        ),
        cost_estimate=pl.CostEstimate(
            flops=int(flops), transcendentals=0,
            bytes_accessed=int(bytes_accessed)),
    )(*args)

    wgan_loss = out[0]
    gp_loss = out[1] if compute_gp else 0.0
    drift_loss = out[2] if compute_drift else 0.0
    return wgan_loss, gp_loss, drift_loss


# ------------------------------ pure-JAX reference ------------------------------
def _disc_ref(x2d, W1, b1, w2, b2):
    h = jnp.dot(x2d, W1, precision=jax.lax.Precision.HIGHEST) + b1
    a = jnp.where(h > 0, h, NEG_SLOPE * h)
    return jnp.dot(a, w2.T, precision=jax.lax.Precision.HIGHEST) + b2


def _reference(fakes, reals, interp_w, params, gp_param, drift_param):
    W1, b1, w2, b2 = params
    n = fakes.shape[0]
    f2d = fakes.reshape(n, -1)
    r2d = reals.reshape(n, -1)
    w = interp_w.reshape(n, 1)

    fo = _disc_ref(f2d, W1, b1, w2, b2)
    ro = _disc_ref(r2d, W1, b1, w2, b2)
    wgan = fo.mean() - ro.mean()

    interp = f2d * (1.0 - w) + r2d * w
    grad = jax.grad(lambda x: jnp.sum(_disc_ref(x, W1, b1, w2, b2)))(interp)
    gp = gp_param * jnp.mean((jnp.linalg.norm(grad.reshape(n, -1), axis=1) - 1.0) ** 2)
    drift = drift_param * jnp.mean(ro ** 2)
    return wgan, gp, drift


if __name__ == "__main__":
    key = jax.random.PRNGKey(0)
    k_f, k_r, k_w1, k_w2, k_eps = jax.random.split(key, 5)

    N, C, H, W = 2, 4, 16, 16
    F = C * H * W          # 1024 flattened features
    HID = 128              # hidden width of the synthetic discriminator

    fakes = jax.random.normal(k_f, (N, C, H, W), dtype=jnp.float32)
    reals = jax.random.normal(k_r, (N, C, H, W), dtype=jnp.float32)
    # torch.rand(batch, 1, 1, 1) equivalent (per-sample interpolation weight)
    interp_w = jax.random.uniform(k_eps, (N, 1, 1, 1), dtype=jnp.float32)

    # deterministic synthetic discriminator parameters
    W1 = 0.02 * jax.random.normal(k_w1, (F, HID), dtype=jnp.float32)
    b1 = jnp.zeros((1, HID), dtype=jnp.float32)
    w2 = 0.02 * jax.random.normal(k_w2, (1, HID), dtype=jnp.float32)
    b2 = jnp.zeros((1, 1), dtype=jnp.float32)
    params = (W1, b1, w2, b2)

    gp_param, drift_param = 10.0, 0.001

    wgan_loss, gp_loss, drift_loss = wgan_gp_discriminator_loss(
        fakes, reals, interp_w, params, gp_param, drift_param)
    jax.block_until_ready((wgan_loss, gp_loss, drift_loss))

    ref = _reference(fakes, reals, interp_w, params, gp_param, drift_param)
    got = jnp.stack([wgan_loss, gp_loss, drift_loss])
    want = jnp.stack(list(ref))
    # bf16 streaming of W1 / inputs (with f32 accumulation) -> slightly looser tol.
    assert jnp.allclose(got, want, rtol=3e-2, atol=5e-3), (got, want)

    # gp_param=None path: GP branch (interp weights, Gram scratch, sqrt) is elided.
    wgan2, gp2, drift2 = wgan_gp_discriminator_loss(
        fakes, reals, interp_w, params, None, drift_param)
    jax.block_until_ready((wgan2, drift2))
    assert gp2 == 0.0
    assert jnp.allclose(wgan2, want[0], rtol=3e-2, atol=5e-3), (wgan2, want[0])
    assert jnp.allclose(drift2, want[2], rtol=3e-2, atol=5e-3), (drift2, want[2])

    print("KERNEL_OK")
</pallas_src>

<mosaic_0001>
module attributes {stable_mosaic.version = 11 : i64} {
  func.func @_wgan_gp_kernel(%arg0: i32, %arg1: memref<16x1024xbf16, #tpu.memory_space<vmem>>, %arg2: memref<1024x128xbf16, #tpu.memory_space<vmem>>, %arg3: memref<1x128xf32, #tpu.memory_space<vmem>>, %arg4: memref<1x128xf32, #tpu.memory_space<vmem>>, %arg5: memref<8x1xf32, #tpu.memory_space<vmem>>, %arg6: memref<1xf32, #tpu.memory_space<smem>>, %arg7: memref<3xf32, #tpu.memory_space<smem>>, %arg8: memref<16x128xf32, #tpu.memory_space<vmem>>, %arg9: memref<128x128xf32, #tpu.memory_space<vmem>>) attributes {dimension_semantics = [#tpu.dimension_semantics<arbitrary>], iteration_bounds = array<i64: 1>, scalar_prefetch = 0 : i64, scratch_operands = 2 : i64, tpu.core_type = #tpu.core_type<tc>, window_params = [{transform_indices = @transform_0, window_bounds = array<i64: 16, 1024>}, {transform_indices = @transform_1, window_bounds = array<i64: 1024, 128>}, {pipeline_mode = #tpu.pipeline_mode<synchronous>, transform_indices = @transform_2, window_bounds = array<i64: 1, 128>}, {pipeline_mode = #tpu.pipeline_mode<synchronous>, transform_indices = @transform_3, window_bounds = array<i64: 1, 128>}, {pipeline_mode = #tpu.pipeline_mode<synchronous>, transform_indices = @transform_4, window_bounds = array<i64: 8, 1>}, {transform_indices = @transform_5, window_bounds = array<i64: 1>}, {transform_indices = @transform_6, window_bounds = array<i64: 3>}]} {
    %c0_i32 = arith.constant 0 : i32
    %0 = arith.cmpi eq, %arg0, %c0_i32 : i32
    %1 = arith.extui %0 : i1 to i32
    %c0_i32_0 = arith.constant 0 : i32
    %2 = arith.cmpi ne, %1, %c0_i32_0 : i32
    scf.if %2 {
      %cst_15 = arith.constant 0.000000e+00 : f32
      %16 = vector.broadcast %cst_15 : f32 to vector<16x128xf32>
      %c0_16 = arith.constant 0 : index
      %c0_17 = arith.constant 0 : index
      %17 = vector.load %arg8[%c0_16, %c0_17] : memref<16x128xf32, #tpu.memory_space<vmem>>, vector<16x128xf32>
      tpu.vector_store %arg8[%c0_16, %c0_17], %16 {strides = array<i32>} : memref<16x128xf32, #tpu.memory_space<vmem>>, vector<16x128xf32>,
      %cst_18 = arith.constant 0.000000e+00 : f32
      %18 = vector.broadcast %cst_18 : f32 to vector<128x128xf32>
      %c0_19 = arith.constant 0 : index
      %c0_20 = arith.constant 0 : index
      %19 = vector.load %arg9[%c0_19, %c0_20] : memref<128x128xf32, #tpu.memory_space<vmem>>, vector<128x128xf32>
      tpu.vector_store %arg9[%c0_19, %c0_20], %18 {strides = array<i32>} : memref<128x128xf32, #tpu.memory_space<vmem>>, vector<128x128xf32>,
    } else {
    }
    %c0 = arith.constant 0 : index
    %c0_1 = arith.constant 0 : index
    %3 = vector.load %arg1[%c0, %c0_1] : memref<16x1024xbf16, #tpu.memory_space<vmem>>, vector<16x1024xbf16>
    %c0_2 = arith.constant 0 : index
    %c0_3 = arith.constant 0 : index
    %4 = vector.load %arg2[%c0_2, %c0_3] : memref<1024x128xbf16, #tpu.memory_space<vmem>>, vector<1024x128xbf16>
    %c0_4 = arith.constant 0 : index
    %c0_5 = arith.constant 0 : index
    %5 = vector.load %arg8[%c0_4, %c0_5] : memref<16x128xf32, #tpu.memory_space<vmem>>, vector<16x128xf32>
    %cst = arith.constant dense<0.000000e+00> : vector<16x128xf32>
    %6 = tpu.matmul %3, %4, %cst {dimension_numbers = #tpu.dot_dimension_numbers<[1], [0], [0], [1], [0, 0, 1, 1], [], []>} : vector<16x1024xbf16>, vector<1024x128xbf16>, vector<16x128xf32> -> vector<16x128xf32>
    %7 = arith.addf %5, %6 : vector<16x128xf32>
    %c0_6 = arith.constant 0 : index
    %c0_7 = arith.constant 0 : index
    %8 = vector.load %arg8[%c0_6, %c0_7] : memref<16x128xf32, #tpu.memory_space<vmem>>, vector<16x128xf32>
    tpu.vector_store %arg8[%c0_6, %c0_7], %7 {strides = array<i32>} : memref<16x128xf32, #tpu.memory_space<vmem>>, vector<16x128xf32>,
    %c0_8 = arith.constant 0 : index
    %c0_9 = arith.constant 0 : index
    %9 = vector.load %arg9[%c0_8, %c0_9] : memref<128x128xf32, #tpu.memory_space<vmem>>, vector<128x128xf32>
    %cst_10 = arith.constant dense<0.000000e+00> : vector<128x128xf32>
    %10 = tpu.matmul %4, %4, %cst_10 {dimension_numbers = #tpu.dot_dimension_numbers<[0], [0], [1], [1], [0, 1, 1, 1], [], []>} : vector<1024x128xbf16>, vector<1024x128xbf16>, vector<128x128xf32> -> vector<128x128xf32>
    %11 = arith.addf %9, %10 : vector<128x128xf32>
    %c0_11 = arith.constant 0 : index
    %c0_12 = arith.constant 0 : index
    %12 = vector.load %arg9[%c0_11, %c0_12] : memref<128x128xf32, #tpu.memory_space<vmem>>, vector<128x128xf32>
    tpu.vector_store %arg9[%c0_11, %c0_12], %11 {strides = array<i32>} : memref<128x128xf32, #tpu.memory_space<vmem>>, vector<128x128xf32>,
    %c0_i32_13 = arith.constant 0 : i32
    %13 = arith.cmpi eq, %arg0, %c0_i32_13 : i32
    %14 = arith.extui %13 : i1 to i32
    %c0_i32_14 = arith.constant 0 : i32
    %15 = arith.cmpi ne, %14, %c0_i32_14 : i32
    scf.if %15 {
      %c0_15 = arith.constant 0 : index
      %c0_16 = arith.constant 0 : index
      %16 = vector.load %arg3[%c0_15, %c0_16] : memref<1x128xf32, #tpu.memory_space<vmem>>, vector<1x128xf32>
      %c0_17 = arith.constant 0 : index
      %c0_18 = arith.constant 0 : index
      %17 = vector.load %arg4[%c0_17, %c0_18] : memref<1x128xf32, #tpu.memory_space<vmem>>, vector<1x128xf32>
      %c0_19 = arith.constant 0 : index
      %18 = memref.load %arg6[%c0_19] : memref<1xf32, #tpu.memory_space<smem>>
      %c0_20 = arith.constant 0 : index
      %c0_21 = arith.constant 0 : index
      %19 = vector.load %arg8[%c0_20, %c0_21] : memref<16x128xf32, #tpu.memory_space<vmem>>, vector<16x128xf32>
      %20 = vector.broadcast %16 : vector<1x128xf32> to vector<16x128xf32>
      %21 = arith.addf %19, %20 : vector<16x128xf32>
      %cst_22 = arith.constant 0.000000e+00 : f32
      %22 = vector.broadcast %cst_22 : f32 to vector<16x128xf32>
      %23 = arith.cmpf ogt, %21, %22 : vector<16x128xf32>
      %cst_23 = arith.constant 2.000000e-01 : f32
      %24 = vector.broadcast %cst_23 : f32 to vector<16x128xf32>
      %25 = arith.mulf %24, %21 : vector<16x128xf32>
      %26 = arith.select %23, %21, %25 : vector<16x128xi1>, vector<16x128xf32>
      %27 = vector.broadcast %17 : vector<1x128xf32> to vector<16x128xf32>
      %28 = arith.mulf %26, %27 : vector<16x128xf32>
      %cst_24 = arith.constant dense<0.000000e+00> : vector<16xf32>
      %29 = vector.multi_reduction <add>, %28, %cst_24 [1] : vector<16x128xf32> to vector<16xf32>
      %30 = vector.shape_cast %29 : vector<16xf32> to vector<16x1xf32>
      %31 = vector.broadcast %18 : f32 to vector<16x1xf32>
      %32 = arith.addf %30, %31 : vector<16x1xf32>
      %33 = tpu.iota {dimensions = array<i32: 0>} : vector<8x1xi32>
      %c2_i32 = arith.constant 2 : i32
      %34 = vector.broadcast %c2_i32 : i32 to vector<8x1xi32>
      %35 = arith.cmpi slt, %33, %34 : vector<8x1xi32>
      %36 = vector.extract_strided_slice %32 {offsets = [0, 0], sizes = [8, 1], strides = [1, 1]} : vector<16x1xf32> to vector<8x1xf32>
      %37 = vector.extract_strided_slice %32 {offsets = [8, 0], sizes = [8, 1], strides = [1, 1]} : vector<16x1xf32> to vector<8x1xf32>
      %cst_25 = arith.constant 0.000000e+00 : f32
      %38 = vector.broadcast %cst_25 : f32 to vector<8x1xf32>
      %39 = arith.select %35, %36, %38 : vector<8x1xi1>, vector<8x1xf32>
      %40 = vector.shape_cast %39 : vector<8x1xf32> to vector<1x8x1xf32>
      %cst_26 = arith.constant dense<0.000000e+00> : vector<1xf32>
      %41 = vector.multi_reduction <add>, %40, %cst_26 [1, 2] : vector<1x8x1xf32> to vector<1xf32>
      %42 = vector.shape_cast %41 : vector<1xf32> to vector<1x1x1xf32>
      %43 = vector.extract %42[0, 0, 0] : f32 from vector<1x1x1xf32>
      %cst_27 = arith.constant 0.000000e+00 : f32
      %44 = vector.broadcast %cst_27 : f32 to vector<8x1xf32>
      %45 = arith.select %35, %37, %44 : vector<8x1xi1>, vector<8x1xf32>
      %46 = vector.shape_cast %45 : vector<8x1xf32> to vector<1x8x1xf32>
      %cst_28 = arith.constant dense<0.000000e+00> : vector<1xf32>
      %47 = vector.multi_reduction <add>, %46, %cst_28 [1, 2] : vector<1x8x1xf32> to vector<1xf32>
      %48 = vector.shape_cast %47 : vector<1xf32> to vector<1x1x1xf32>
      %49 = vector.extract %48[0, 0, 0] : f32 from vector<1x1x1xf32>
      %50 = arith.mulf %37, %37 : vector<8x1xf32>
      %cst_29 = arith.constant 0.000000e+00 : f32
      %51 = vector.broadcast %cst_29 : f32 to vector<8x1xf32>
      %52 = arith.select %35, %50, %51 : vector<8x1xi1>, vector<8x1xf32>
      %53 = vector.shape_cast %52 : vector<8x1xf32> to vector<1x8x1xf32>
      %cst_30 = arith.constant dense<0.000000e+00> : vector<1xf32>
      %54 = vector.multi_reduction <add>, %53, %cst_30 [1, 2] : vector<1x8x1xf32> to vector<1xf32>
      %55 = vector.shape_cast %54 : vector<1xf32> to vector<1x1x1xf32>
      %56 = vector.extract %55[0, 0, 0] : f32 from vector<1x1x1xf32>
      %57 = arith.subf %43, %49 : f32
      %cst_31 = arith.constant 2.000000e+00 : f32
      %58 = arith.divf %57, %cst_31 : f32
      %c0_32 = arith.constant 0 : index
      %59 = memref.load %arg7[%c0_32] : memref<3xf32, #tpu.memory_space<smem>>
      memref.store %58, %arg7[%c0_32] : memref<3xf32, #tpu.memory_space<smem>>
      %cst_33 = arith.constant 2.000000e+00 : f32
      %60 = arith.divf %56, %cst_33 : f32
      %cst_34 = arith.constant 1.000000e-03 : f32
      %61 = arith.mulf %cst_34, %60 : f32
      %c2 = arith.constant 2 : index
      %62 = memref.load %arg7[%c2] : memref<3xf32, #tpu.memory_space<smem>>
      memref.store %61, %arg7[%c2] : memref<3xf32, #tpu.memory_space<smem>>
      %c0_35 = arith.constant 0 : index
      %c0_36 = arith.constant 0 : index
      %63 = vector.load %arg5[%c0_35, %c0_36] : memref<8x1xf32, #tpu.memory_space<vmem>>, vector<8x1xf32>
      %cst_37 = arith.constant 1.000000e+00 : f32
      %64 = vector.broadcast %cst_37 : f32 to vector<8x1xf32>
      %65 = arith.subf %64, %63 : vector<8x1xf32>
      %66 = vector.extract_strided_slice %21 {offsets = [0, 0], sizes = [8, 128], strides = [1, 1]} : vector<16x128xf32> to vector<8x128xf32>
      %67 = vector.broadcast %65 : vector<8x1xf32> to vector<8x128xf32>
      %68 = arith.mulf %67, %66 : vector<8x128xf32>
      %69 = vector.extract_strided_slice %21 {offsets = [8, 0], sizes = [8, 128], strides = [1, 1]} : vector<16x128xf32> to vector<8x128xf32>
      %70 = vector.broadcast %63 : vector<8x1xf32> to vector<8x128xf32>
      %71 = arith.mulf %70, %69 : vector<8x128xf32>
      %72 = arith.addf %68, %71 : vector<8x128xf32>
      %cst_38 = arith.constant 0.000000e+00 : f32
      %73 = vector.broadcast %cst_38 : f32 to vector<8x128xf32>
      %74 = arith.cmpf ogt, %72, %73 : vector<8x128xf32>
      %cst_39 = arith.constant 1.000000e+00 : f32
      %cst_40 = arith.constant 2.000000e-01 : f32
      %75 = vector.broadcast %cst_39 : f32 to vector<8x128xf32>
      %76 = vector.broadcast %cst_40 : f32 to vector<8x128xf32>
      %77 = arith.select %74, %75, %76 : vector<8x128xi1>, vector<8x128xf32>
      %78 = vector.broadcast %17 : vector<1x128xf32> to vector<8x128xf32>
      %79 = arith.mulf %78, %77 : vector<8x128xf32>
      %c0_41 = arith.constant 0 : index
      %c0_42 = arith.constant 0 : index
      %80 = vector.load %arg9[%c0_41, %c0_42] : memref<128x128xf32, #tpu.memory_space<vmem>>, vector<128x128xf32>
      %cst_43 = arith.constant dense<0.000000e+00> : vector<8x128xf32>
      %81 = tpu.matmul %79, %80, %cst_43 {dimension_numbers = #tpu.dot_dimension_numbers<[1], [0], [0], [1], [0, 0, 1, 1], [], []>} : vector<8x128xf32>, vector<128x128xf32>, vector<8x128xf32> -> vector<8x128xf32>
      %82 = arith.mulf %81, %79 : vector<8x128xf32>
      %cst_44 = arith.constant dense<0.000000e+00> : vector<8xf32>
      %83 = vector.multi_reduction <add>, %82, %cst_44 [1] : vector<8x128xf32> to vector<8xf32>
      %84 = vector.shape_cast %83 : vector<8xf32> to vector<8x1xf32>
      %cst_45 = arith.constant 0.000000e+00 : f32
      %85 = vector.broadcast %cst_45 : f32 to vector<8x1xf32>
      %86 = arith.maximumf %84, %85 : vector<8x1xf32>
      %87 = math.sqrt %86 : vector<8x1xf32>
      %cst_46 = arith.constant 1.000000e+00 : f32
      %88 = vector.broadcast %cst_46 : f32 to vector<8x1xf32>
      %89 = arith.subf %87, %88 : vector<8x1xf32>
      %90 = arith.mulf %89, %89 : vector<8x1xf32>
      %cst_47 = arith.constant 0.000000e+00 : f32
      %91 = vector.broadcast %cst_47 : f32 to vector<8x1xf32>
      %92 = arith.select %35, %90, %91 : vector<8x1xi1>, vector<8x1xf32>
      %93 = vector.shape_cast %92 : vector<8x1xf32> to vector<1x8x1xf32>
      %cst_48 = arith.constant dense<0.000000e+00> : vector<1xf32>
      %94 = vector.multi_reduction <add>, %93, %cst_48 [1, 2] : vector<1x8x1xf32> to vector<1xf32>
      %95 = vector.shape_cast %94 : vector<1xf32> to vector<1x1x1xf32>
      %96 = vector.extract %95[0, 0, 0] : f32 from vector<1x1x1xf32>
      %cst_49 = arith.constant 2.000000e+00 : f32
      %97 = arith.divf %96, %cst_49 : f32
      %cst_50 = arith.constant 1.000000e+01 : f32
      %98 = arith.mulf %cst_50, %97 : f32
      %c1 = arith.constant 1 : index
      %99 = memref.load %arg7[%c1] : memref<3xf32, #tpu.memory_space<smem>>
      memref.store %98, %arg7[%c1] : memref<3xf32, #tpu.memory_space<smem>>
    } else {
    }
    return
  }
  func.func @transform_0(%arg0: i32) -> (i32, i32) {
    %c0_i32 = arith.constant 0 : i32
    %c0_i32_0 = arith.constant 0 : i32
    return %c0_i32, %arg0 : i32, i32
  }
  func.func @transform_1(%arg0: i32) -> (i32, i32) {
    %c0_i32 = arith.constant 0 : i32
    %c0_i32_0 = arith.constant 0 : i32
    return %arg0, %c0_i32 : i32, i32
  }
  func.func @transform_2(%arg0: i32) -> (i32, i32) {
    %c0_i32 = arith.constant 0 : i32
    %c0_i32_0 = arith.constant 0 : i32
    %c0_i32_1 = arith.constant 0 : i32
    return %c0_i32, %c0_i32_0 : i32, i32
  }
  func.func @transform_3(%arg0: i32) -> (i32, i32) {
    %c0_i32 = arith.constant 0 : i32
    %c0_i32_0 = arith.constant 0 : i32
    %c0_i32_1 = arith.constant 0 : i32
    return %c0_i32, %c0_i32_0 : i32, i32
  }
  func.func @transform_4(%arg0: i32) -> (i32, i32) {
    %c0_i32 = arith.constant 0 : i32
    %c0_i32_0 = arith.constant 0 : i32
    %c0_i32_1 = arith.constant 0 : i32
    return %c0_i32, %c0_i32_0 : i32, i32
  }
  func.func @transform_5(%arg0: i32) -> i32 {
    %c0_i32 = arith.constant 0 : i32
    %c0_i32_0 = arith.constant 0 : i32
    return %c0_i32 : i32
  }
  func.func @transform_6(%arg0: i32) -> i32 {
    %c0_i32 = arith.constant 0 : i32
    %c0_i32_0 = arith.constant 0 : i32
    return %c0_i32 : i32
  }
}

</mosaic_0001>

<bundles_post_ra>
// kernel: tpu_custom_call.1
= control target key start
LH: loop header
LB: loop body
LE: loop exit
PB: predicated region body
PF: predicated region fallthrough
CT: control target
= control target key end

     0   :  { %12 = vsyncpa [#allocation6], 0  ;;  %s2794_s0 = inlined_call_operand.hbm [shape: bf16[16,1024], index: 0, kind: input, shape index: {}]   ;;  %s2795_s1 = inlined_call_operand.hbm [shape: bf16[1024,128], index: 1, kind: input, shape index: {}]   ;;  %s2796_s2 = inlined_call_operand.vmem [shape: f32[1,128], index: 2, kind: input, shape index: {}]   ;;  %s2797_s3 = inlined_call_operand.vmem [shape: f32[1,128], index: 3, kind: input, shape index: {}]   ;;  %s2798_s4 = inlined_call_operand.vmem [shape: f32[8,1], index: 4, kind: input, shape index: {}]   ;;  %s2799_s5 = inlined_call_operand.<no memory space> [shape: f32[1], index: 5, kind: input, shape index: {}]   ;;  %s2800_s6 = inlined_call_operand.hbm [shape: f32[3], index: 6, kind: output, shape index: {}]  }
   0x1   :  { %13 = vsyncpa [#allocation9], 0 }
   0x2   :  { %14 = vsyncpa [#allocation7], 0  ;;  %s2249_s21 = smov [#allocation5]   ;;  %s2189_s25 = scalar_lea.hbm %s2794_s0, 1024 }
   0x3   :  { %s20_s22 = sshll.u32 %s2249_s21, 4  ;;  %p2190_p0 = scmp.ne.s32.totalorder %s2794_s0, %s2189_s25  ;;  %s21_s22 = int_to_ptr.vmem [resolvable:$true] %s20_s22 }
   0x4   :  { %p2193_p1 = scmp.lt.u32.totalorder %s2189_s25, %s2794_s0 }
   0x6   :  { %p2195_p2 = pnand %p2193_p1, %p2190_p0 }
   0x8   :  { %2198 = shalt.err (!%p2195_p2)
}
   0x9   :  { %s2199_s30 = scalar_lea.vmem %s21_s22, 1024  ;;  %p2204_p4 = scmp.lt.s32.totalorder %s21_s22, %s21_s22 }
   0xa   :  { %p2200_p3 = scmp.ne.s32.totalorder %s21_s22, %s2199_s30  ;;  %p2205_p5 = scmp.lt.s32.totalorder %s2199_s30, %s2199_s30 }
   0xc   :  { %p2206_p6 = por %p2205_p5, %p2204_p4 }
   0xe   :  { %p2207_p7 = pnand %p2206_p6, %p2200_p3 }
  0x10   :  { %2210 = shalt.err (!%p2207_p7)
}
  0x11   :  { %s2250_s7 = smov 512   ;;  %s2251_s8 = smov 32  }
  0x12   :  { %26 = dma.hbm_to_vmem [thread:$0]  %s2794_s0, 1024, %s21_s22, [#allocation6], %s2250_s7, %s2250_s7, %s2251_s8  }
  0x13   :  { %s2252_s11 = smov [#allocation8]   ;;  %s2211_s15 = scalar_lea.hbm %s2795_s1, 8192 }
  0x14   :  { %s32_s12 = sshll.u32 %s2252_s11, 4  ;;  %p2212_p8 = scmp.ne.s32.totalorder %s2795_s1, %s2211_s15  ;;  %s33_s12 = int_to_ptr.vmem [resolvable:$true] %s32_s12 }
  0x15   :  { %p2215_p9 = scmp.lt.u32.totalorder %s2211_s15, %s2795_s1 }
  0x17   :  { %p2217_p10 = pnand %p2215_p9, %p2212_p8 }
  0x19   :  { %2220 = shalt.err (!%p2217_p10)
}
  0x1a   :  { %s2221_s20 = scalar_lea.vmem %s33_s12, 8192  ;;  %p2226_p12 = scmp.lt.s32.totalorder %s33_s12, %s33_s12 }
  0x1b   :  { %p2222_p11 = scmp.ne.s32.totalorder %s33_s12, %s2221_s20  ;;  %p2227_p13 = scmp.lt.s32.totalorder %s2221_s20, %s2221_s20 }
  0x1d   :  { %p2228_p0 = por %p2227_p13, %p2226_p12 }
  0x1f   :  { %p2229_p1 = pnand %p2228_p0, %p2222_p11 }
  0x21   :  { %2232 = shalt.err (!%p2229_p1)
}
  0x22   :  { %s2253_s0 = smov 64   ;;  %s2254_s21 = smov 4  }
  0x23   :  { %38 = dma.hbm_to_vmem [thread:$0]  %s2795_s1, 8192, %s33_s12, [#allocation9], %s2253_s0, %s2253_s0, %s2254_s21  }
  0x24   :  { %2243 = dma.done.wait [#allocation6], 1024  }
  0x25   :  { %2244 = vsyncadd [#allocation6], 4294966272 }
  0x26   :  { %2245 = dma.done.wait [#allocation9], 8192  }
  0x27   :  { %2246 = vsyncadd [#allocation9], 4294959104  ;;  %v2320_v0 = vld [vmem:[#allocation8 + $0x40] sm:$0xff]   ;;  %v2333_v4 = vld [vmem:[#allocation8 + $0x48] sm:$0xff]   ;;  %vm2258_vm3 = vmmov 0   ;;  %vm1411_vm5 = vcmask 7168  }
  0x28   :  { %v2322_v1 = vld [vmem:[#allocation8] sm:$0xff]   ;;  %838 = vxpose.xlu0.c.b16.start [1/8] %v2320_v0, 128  ;;  %1681 = vmatprep.subr.bf16.mxu0 %v2320_v0  ;;  %v2336_v5 = vld [vmem:[#allocation8 + $0x8] sm:$0xff]   ;;  %v2347_v8 = vld [vmem:[#allocation8 + $0x50] sm:$0xff]   ;;  %s2233_s19 = scalar_lea.hbm %s2800_s6, 16 }
  0x29   :  { %v2326_v2 = vld [vmem:[#allocation8 + $0xc0] sm:$0xff]   ;;  %822 = vxpose.xlu1.c.b16.start [1/8] %v2322_v1, 128  ;;  %1682 = vmatpush3.bf16.msra.mxu0 %v2322_v1  ;;  %v2340_v6 = vld [vmem:[#allocation8 + $0xc8] sm:$0xff]   ;;  %v2350_v9 = vld [vmem:[#allocation8 + $0x10] sm:$0xff]   ;;  %p2234_p2 = scmp.ne.s32.totalorder %s2800_s6, %s2233_s19  ;;  %p2237_p3 = scmp.lt.u32.totalorder %s2233_s19, %s2800_s6 }
  0x2a   :  { %v2330_v3 = vld [vmem:[#allocation8 + $0x80] sm:$0xff]   ;;  %1703 = vmatprep.subr.bf16.mxu1 %v2326_v2  ;;  %1683 = vmatprep.subr.bf16.mxu0 %v2333_v4  ;;  %v2344_v7 = vld [vmem:[#allocation8 + $0x88] sm:$0xff]   ;;  %v2354_v10 = vld [vmem:[#allocation8 + $0xd0] sm:$0xff]  }
  0x2b   :  { %1704 = vmatpush3.bf16.msra.mxu1 %v2330_v3  ;;  %v2358_v11 = vld [vmem:[#allocation8 + $0x90] sm:$0xff]   ;;  %v2361_v12 = vld [vmem:[#allocation8 + $0x58] sm:$0xff]   ;;  %v2375_v16 = vld [vmem:[#allocation8 + $0x60] sm:$0xff]   ;;  %p2239_p4 = pnand %p2237_p3, %p2234_p2 }
  0x2c   :  { %839 = vxpose.xlu0.c.b16.cont [2/8] %v2333_v4, 128  ;;  %1705 = vmatprep.subr.bf16.mxu1 %v2340_v6  ;;  %v2364_v13 = vld [vmem:[#allocation8 + $0x18] sm:$0xff]   ;;  %v2378_v17 = vld [vmem:[#allocation8 + $0x20] sm:$0xff]   ;;  %v2389_v20 = vld [vmem:[#allocation8 + $0x68] sm:$0xff]  }
  0x2d   :  { %823 = vxpose.xlu1.c.b16.cont [2/8] %v2336_v5, 128  ;;  %1684 = vmatpush3.bf16.msra.mxu0 %v2336_v5  ;;  %v2368_v14 = vld [vmem:[#allocation8 + $0xd8] sm:$0xff]   ;;  %v2382_v18 = vld [vmem:[#allocation8 + $0xe0] sm:$0xff]   ;;  %v2392_v21 = vld [vmem:[#allocation8 + $0x28] sm:$0xff]  }
  0x2e   :  { %1685 = vmatprep.subr.bf16.mxu0 %v2347_v8  ;;  %v2372_v15 = vld [vmem:[#allocation8 + $0x98] sm:$0xff]   ;;  %v2386_v19 = vld [vmem:[#allocation8 + $0xa0] sm:$0xff]   ;;  %v2396_v22 = vld [vmem:[#allocation8 + $0xe8] sm:$0xff]  }
  0x2f   :  { %1706 = vmatpush3.bf16.msra.mxu1 %v2344_v7  ;;  %v2400_v23 = vld [vmem:[#allocation8 + $0xa8] sm:$0xff]   ;;  %v2403_v24 = vld [vmem:[#allocation8 + $0x70] sm:$0xff]   ;;  %v2417_v28 = vld [vmem:[#allocation8 + $0x78] sm:$0xff]  }
  0x30   :  { %840 = vxpose.xlu0.c.b16.cont [3/8] %v2347_v8, 128  ;;  %1707 = vmatprep.subr.bf16.mxu1 %v2354_v10  ;;  %v2406_v25 = vld [vmem:[#allocation8 + $0x30] sm:$0xff]   ;;  %v2420_v29 = vld [vmem:[#allocation8 + $0x38] sm:$0xff]   ;;  %v76_v32 = vld [vmem:[#allocation5] sm:$0xff] }
  0x31   :  { %824 = vxpose.xlu1.c.b16.cont [3/8] %v2350_v9, 128  ;;  %1686 = vmatpush3.bf16.msra.mxu0 %v2350_v9  ;;  %v2410_v26 = vld [vmem:[#allocation8 + $0xf0] sm:$0xff]   ;;  %v2424_v30 = vld [vmem:[#allocation8 + $0xf8] sm:$0xff]   ;;  %v80_v33 = vld [vmem:[#allocation5 + $0x20] sm:$0xff] }
  0x32   :  { %1687 = vmatprep.subr.bf16.mxu0 %v2361_v12  ;;  %v2414_v27 = vld [vmem:[#allocation8 + $0xb0] sm:$0xff]   ;;  %v2428_v31 = vld [vmem:[#allocation8 + $0xb8] sm:$0xff]   ;;  %v1606_v34 = vcombine.low %v76_v32, %v80_v33  ;;  %v1607_v35 = vcombine.high %v76_v32, %v80_v33  ;;  %v2432_v36 = vld [vmem:[#allocation8 + $0x140] sm:$0xff]  }
  0x33   :  { %1708 = vmatpush3.bf16.msra.mxu1 %v2358_v11  ;;  %v2435_v37 = vld [vmem:[#allocation8 + $0x100] sm:$0xff]   ;;  %v77_v38 = vld [vmem:[#allocation5 + $0x8] sm:$0xff]  ;;  %v2459_v48 = vld [vmem:[#allocation8 + $0x150] sm:$0xff]  }
  0x34   :  { %841 = vxpose.xlu0.c.b16.cont [4/8] %v2361_v12, 128  ;;  %1709 = vmatprep.subr.bf16.mxu1 %v2368_v14  ;;  %v81_v39 = vld [vmem:[#allocation5 + $0x28] sm:$0xff]  ;;  %v2439_v42 = vld [vmem:[#allocation8 + $0x1c0] sm:$0xff]   ;;  %v2462_v49 = vld [vmem:[#allocation8 + $0x110] sm:$0xff]  }
  0x35   :  { %825 = vxpose.xlu1.c.b16.cont [4/8] %v2364_v13, 128  ;;  %1688 = vmatpush3.bf16.msra.mxu0 %v2364_v13  ;;  %v1608_v40 = vcombine.low %v77_v38, %v81_v39  ;;  %v1609_v41 = vcombine.high %v77_v38, %v81_v39  ;;  %v2442_v43 = vld [vmem:[#allocation8 + $0x180] sm:$0xff]   ;;  %v2445_v44 = vld [vmem:[#allocation8 + $0x148] sm:$0xff]   ;;  %v2466_v50 = vld [vmem:[#allocation8 + $0x1d0] sm:$0xff]  }
  0x36   :  { %1689 = vmatprep.subr.bf16.mxu0 %v2375_v16  ;;  %670 = vmatprep.mubr.bf16.mxu0 %v1607_v35  ;;  %v2448_v45 = vld [vmem:[#allocation8 + $0x108] sm:$0xff]   ;;  %v2470_v51 = vld [vmem:[#allocation8 + $0x190] sm:$0xff]   ;;  %v2473_v52 = vld [vmem:[#allocation8 + $0x158] sm:$0xff]  }
  0x37   :  { %1710 = vmatpush3.bf16.msra.mxu1 %v2372_v15  ;;  %711 = vmatprep.mubr.bf16.mxu1 %v1609_v41  ;;  %v2452_v46 = vld [vmem:[#allocation8 + $0x1c8] sm:$0xff]   ;;  %v2476_v53 = vld [vmem:[#allocation8 + $0x118] sm:$0xff]   ;;  %v2487_v56 = vld [vmem:[#allocation8 + $0x160] sm:$0xff]  }
  0x38   :  { %842 = vxpose.xlu0.c.b16.cont [5/8] %v2375_v16, 128  ;;  %1711 = vmatprep.subr.bf16.mxu1 %v2382_v18  ;;  %v2456_v47 = vld [vmem:[#allocation8 + $0x188] sm:$0xff]   ;;  %v2480_v54 = vld [vmem:[#allocation8 + $0x1d8] sm:$0xff]   ;;  %v2490_v57 = vld [vmem:[#allocation8 + $0x120] sm:$0xff]  }
  0x39   :  { %826 = vxpose.xlu1.c.b16.cont [5/8] %v2378_v17, 128  ;;  %1690 = vmatpush3.bf16.msra.mxu0 %v2378_v17  ;;  %2817 = vst [vmem:[#allocation14_spill] sm:$0xff] %v2480_v54  ;;  %v2484_v55 = vld [vmem:[#allocation8 + $0x198] sm:$0xff]   ;;  %v2494_v58 = vld [vmem:[#allocation8 + $0x1e0] sm:$0xff]   ;;  %v2501_v60 = vld [vmem:[#allocation8 + $0x168] sm:$0xff]  }
  0x3a   :  { %1691 = vmatprep.subr.bf16.mxu0 %v2389_v20  ;;  %2818 = vst [vmem:[#allocation15_spill] sm:$0xff] %v2484_v55  ;;  %2819 = vst [vmem:[#allocation16_spill] sm:$0xff] %v2494_v58  ;;  %v2498_v59 = vld [vmem:[#allocation8 + $0x1a0] sm:$0xff]   ;;  %v2504_v61 = vld [vmem:[#allocation8 + $0x128] sm:$0xff]  }
  0x3b   :  { %1712 = vmatpush3.bf16.msra.mxu1 %v2386_v19  ;;  %2820 = vst [vmem:[#allocation17_spill] sm:$0xff] %v2498_v59  ;;  %v2508_v62 = vld [vmem:[#allocation8 + $0x1e8] sm:$0xff]   ;;  %v2515_v32 = vld [vmem:[#allocation8 + $0x170] sm:$0xff]   ;;  %v2529_v38 = vld [vmem:[#allocation8 + $0x178] sm:$0xff]  }
  0x3c   :  { %843 = vxpose.xlu0.c.b16.cont [6/8] %v2389_v20, 128  ;;  %1713 = vmatprep.subr.bf16.mxu1 %v2396_v22  ;;  %2821 = vst [vmem:[#allocation18_spill] sm:$0xff] %v2508_v62  ;;  %v2512_v63 = vld [vmem:[#allocation8 + $0x1a8] sm:$0xff]   ;;  %v2518_v33 = vld [vmem:[#allocation8 + $0x130] sm:$0xff]   ;;  %v2532_v39 = vld [vmem:[#allocation8 + $0x138] sm:$0xff]  }
  0x3d   :  { %827 = vxpose.xlu1.c.b16.cont [6/8] %v2392_v21, 128  ;;  %1692 = vmatpush3.bf16.msra.mxu0 %v2392_v21  ;;  %2822 = vst [vmem:[#allocation19_spill] sm:$0xff] %v2512_v63  ;;  %v2526_v35 = vld [vmem:[#allocation8 + $0x1b0] sm:$0xff]  }
  0x3e   :  { %1693 = vmatprep.subr.bf16.mxu0 %v2403_v24  ;;  %2824 = vst [vmem:[#allocation21_spill] sm:$0xff] %v2526_v35  ;;  %v78_v41 = vld [vmem:[#allocation5 + $0x10] sm:$0xff] }
  0x3f   :  { %1714 = vmatpush3.bf16.msra.mxu1 %v2400_v23 }
  0x40   :  { %844 = vxpose.xlu0.c.b16.cont [7/8] %v2403_v24, 128  ;;  %1715 = vmatprep.subr.bf16.mxu1 %v2410_v26 }
  0x41   :  { %828 = vxpose.xlu1.c.b16.cont [7/8] %v2406_v25, 128  ;;  %1694 = vmatpush3.bf16.msra.mxu0 %v2406_v25 }
  0x42   :  { %1695 = vmatprep.subr.bf16.mxu0 %v2417_v28 }
  0x43   :  { %1716 = vmatpush3.bf16.msra.mxu1 %v2414_v27 }
  0x44   :  { %845 = vxpose.xlu0.c.b16.end [8/8] %v2417_v28, 128  ;;  %1717 = vmatprep.subr.bf16.mxu1 %v2424_v30 }
  0x45   :  { %829 = vxpose.xlu1.c.b16.end [8/8] %v2420_v29, 128  ;;  %1696 = vmatpush3.bf16.msra.mxu0 %v2420_v29 }
  0x46   :  { %1725 = vmatprep.subr.bf16.mxu0 %v2432_v36 }
  0x47   :  { %1718 = vmatpush3.bf16.msra.mxu1 %v2428_v31 }
  0x48   :  { %870 = vxpose.xlu0.c.b16.start [1/8] %v2326_v2, 128  ;;  %671 = vmatmul.mubr.bf16.vlgmr.msra.gmra.mrb[0].mxu0 %v1606_v34  ;;  %v2522_v34 = vld [vmem:[#allocation8 + $0x1f0] sm:$0xff]  }
  0x49   :  { %854 = vxpose.xlu1.c.b16.start [1/8] %v2330_v3, 128  ;;  %1726 = vmatpush3.bf16.msra.mxu0 %v2435_v37  ;;  %2823 = vst [vmem:[#allocation20_spill] sm:$0xff] %v2522_v34 }
  0x4a   :  { %1747 = vmatprep.subr.bf16.mxu1 %v2439_v42  ;;  %712 = vmatmul.mubr.bf16.vlgmr.msra.gmra.mrb[0].mxu1 %v1608_v40  ;;  %v2536_v40 = vld [vmem:[#allocation8 + $0x1f8] sm:$0xff]  }
  0x4b   :  { %1748 = vmatpush3.bf16.msra.mxu1 %v2442_v43  ;;  %1727 = vmatprep.subr.bf16.mxu0 %v2445_v44 }
  0x4c   :  { %871 = vxpose.xlu0.c.b16.cont [2/8] %v2340_v6, 128  ;;  %1749 = vmatprep.subr.bf16.mxu1 %v2452_v46 }
  0x4d   :  { %855 = vxpose.xlu1.c.b16.cont [2/8] %v2344_v7, 128  ;;  %1728 = vmatpush3.bf16.msra.mxu0 %v2448_v45 }
  0x4e   :  { %1729 = vmatprep.subr.bf16.mxu0 %v2459_v48 }
  0x4f   :  { %1750 = vmatpush3.bf16.msra.mxu1 %v2456_v47 }
  0x50   :  { %872 = vxpose.xlu0.c.b16.cont [3/8] %v2354_v10, 128  ;;  %1751 = vmatprep.subr.bf16.mxu1 %v2466_v50 }
  0x51   :  { %856 = vxpose.xlu1.c.b16.cont [3/8] %v2358_v11, 128  ;;  %1730 = vmatpush3.bf16.msra.mxu0 %v2462_v49 }
  0x52   :  { %1731 = vmatprep.subr.bf16.mxu0 %v2473_v52 }
  0x53   :  { %1752 = vmatpush3.bf16.msra.mxu1 %v2470_v51 }
  0x54   :  { %873 = vxpose.xlu0.c.b16.cont [4/8] %v2368_v14, 128  ;;  %1753 = vmatprep.subr.bf16.mxu1 %v2480_v54 }
  0x55   :  { %857 = vxpose.xlu1.c.b16.cont [4/8] %v2372_v15, 128  ;;  %1732 = vmatpush3.bf16.msra.mxu0 %v2476_v53 }
  0x56   :  { %1733 = vmatprep.subr.bf16.mxu0 %v2487_v56 }
  0x57   :  { %1754 = vmatpush3.bf16.msra.mxu1 %v2484_v55  ;;  %v83_v55 = vld [vmem:[#allocation5 + $0x38] sm:$0xff] }
  0x58   :  { %874 = vxpose.xlu0.c.b16.cont [5/8] %v2382_v18, 128  ;;  %1755 = vmatprep.subr.bf16.mxu1 %v2494_v58  ;;  %v79_v58 = vld [vmem:[#allocation5 + $0x18] sm:$0xff] }
  0x59   :  { %858 = vxpose.xlu1.c.b16.cont [5/8] %v2386_v19, 128  ;;  %1734 = vmatpush3.bf16.msra.mxu0 %v2490_v57  ;;  %v1613_v54 = vcombine.high %v79_v58, %v83_v55 }
  0x5a   :  { %1735 = vmatprep.subr.bf16.mxu0 %v2501_v60 }
  0x5b   :  { %1756 = vmatpush3.bf16.msra.mxu1 %v2498_v59  ;;  %v2540_v59 = vld [vmem:[#allocation8 + $0x1b8] sm:$0xff]   ;;  %793 = vmatprep.mubr.bf16.mxu1 %v1613_v54 }
  0x5c   :  { %875 = vxpose.xlu0.c.b16.cont [6/8] %v2396_v22, 128  ;;  %1757 = vmatprep.subr.bf16.mxu1 %v2508_v62 }
  0x5d   :  { %859 = vxpose.xlu1.c.b16.cont [6/8] %v2400_v23, 128  ;;  %1736 = vmatpush3.bf16.msra.mxu0 %v2504_v61 }
  0x5e   :  { %1737 = vmatprep.subr.bf16.mxu0 %v2515_v32 }
  0x5f   :  { %1758 = vmatpush3.bf16.msra.mxu1 %v2512_v63  ;;  %v82_v63 = vld [vmem:[#allocation5 + $0x30] sm:$0xff] }
  0x60   :  { %876 = vxpose.xlu0.c.b16.cont [7/8] %v2410_v26, 128  ;;  %1759 = vmatprep.subr.bf16.mxu1 %v2522_v34  ;;  %v1610_v62 = vcombine.low %v78_v41, %v82_v63  ;;  %v1611_v34 = vcombine.high %v78_v41, %v82_v63 }
  0x61   :  { %860 = vxpose.xlu1.c.b16.cont [7/8] %v2414_v27, 128  ;;  %1738 = vmatpush3.bf16.msra.mxu0 %v2518_v33 }
  0x62   :  { %1739 = vmatprep.subr.bf16.mxu0 %v2529_v38  ;;  %752 = vmatprep.mubr.bf16.mxu0 %v1611_v34 }
  0x63   :  { %1760 = vmatpush3.bf16.msra.mxu1 %v2526_v35  ;;  %v1612_v35 = vcombine.low %v79_v58, %v83_v55 }
  0x64   :  { %877 = vxpose.xlu0.c.b16.end [8/8] %v2424_v30, 128  ;;  %1761 = vmatprep.subr.bf16.mxu1 %v2536_v40 }
  0x65   :  { %861 = vxpose.xlu1.c.b16.end [8/8] %v2428_v31, 128  ;;  %1740 = vmatpush3.bf16.msra.mxu0 %v2532_v39 }
  0x66   :  { %1769 = vmatprep.subr.bf16.mxu0 %v2320_v0 }
  0x67   :  { %1762 = vmatpush3.bf16.msra.mxu1 %v2540_v59 }
  0x68   :  { %902 = vxpose.xlu0.c.b16.start [1/8] %v2432_v36, 128  ;;  %753 = vmatmul.mubr.bf16.vlgmr.msra.gmra.mrb[4].mxu0 %v1610_v62 }
  0x69   :  { %886 = vxpose.xlu1.c.b16.start [1/8] %v2435_v37, 128  ;;  %1770 = vmatpush3.bf16.msra.mxu0 %v2322_v1 }
  0x6a   :  { %1833 = vmatprep.subr.bf16.mxu1 %v2326_v2  ;;  %794 = vmatmul.mubr.bf16.vlgmr.msra.gmra.mrb[4].mxu1 %v1612_v35 }
  0x6b   :  { %1771 = vmatprep.subr.bf16.mxu0 %v2333_v4  ;;  %1834 = vmatpush3.bf16.msra.mxu1 %v2330_v3  ;;  %v2825_v4 = vld [vmem:[#allocation14_spill] sm:$0xff] }
  0x6c   :  { %903 = vxpose.xlu0.c.b16.cont [2/8] %v2445_v44, 128  ;;  %1835 = vmatprep.subr.bf16.mxu1 %v2340_v6  ;;  %v2826_v6 = vld [vmem:[#allocation15_spill] sm:$0xff] }
  0x6d   :  { %887 = vxpose.xlu1.c.b16.cont [2/8] %v2448_v45, 128  ;;  %1772 = vmatpush3.bf16.msra.mxu0 %v2336_v5 }
  0x6e   :  { %1773 = vmatprep.subr.bf16.mxu0 %v2347_v8  ;;  %v2827_v8 = vld [vmem:[#allocation16_spill] sm:$0xff] }
  0x6f   :  { %1836 = vmatpush3.bf16.msra.mxu1 %v2344_v7 }
  0x70   :  { %904 = vxpose.xlu0.c.b16.cont [3/8] %v2459_v48, 128  ;;  %1837 = vmatprep.subr.bf16.mxu1 %v2354_v10  ;;  %v2828_v10 = vld [vmem:[#allocation17_spill] sm:$0xff] }
  0x71   :  { %888 = vxpose.xlu1.c.b16.cont [3/8] %v2462_v49, 128  ;;  %1774 = vmatpush3.bf16.msra.mxu0 %v2350_v9 }
  0x72   :  { %1775 = vmatprep.subr.bf16.mxu0 %v2361_v12  ;;  %v2829_v12 = vld [vmem:[#allocation18_spill] sm:$0xff] }
  0x73   :  { %1838 = vmatpush3.bf16.msra.mxu1 %v2358_v11 }
  0x74   :  { %905 = vxpose.xlu0.c.b16.cont [4/8] %v2473_v52, 128  ;;  %1839 = vmatprep.subr.bf16.mxu1 %v2368_v14  ;;  %v2830_v14 = vld [vmem:[#allocation19_spill] sm:$0xff] }
  0x75   :  { %889 = vxpose.xlu1.c.b16.cont [4/8] %v2476_v53, 128  ;;  %1776 = vmatpush3.bf16.msra.mxu0 %v2364_v13 }
  0x76   :  { %1777 = vmatprep.subr.bf16.mxu0 %v2375_v16  ;;  %v2831_v16 = vld [vmem:[#allocation20_spill] sm:$0xff] }
  0x77   :  { %1840 = vmatpush3.bf16.msra.mxu1 %v2372_v15 }
  0x78   :  { %906 = vxpose.xlu0.c.b16.cont [5/8] %v2487_v56, 128  ;;  %1841 = vmatprep.subr.bf16.mxu1 %v2382_v18  ;;  %v2832_v18 = vld [vmem:[#allocation21_spill] sm:$0xff] }
  0x79   :  { %890 = vxpose.xlu1.c.b16.cont [5/8] %v2490_v57, 128  ;;  %1778 = vmatpush3.bf16.msra.mxu0 %v2378_v17 }
  0x7a   :  { %1779 = vmatprep.subr.bf16.mxu0 %v2389_v20 }
  0x7b   :  { %1842 = vmatpush3.bf16.msra.mxu1 %v2386_v19 }
  0x7c   :  { %907 = vxpose.xlu0.c.b16.cont [6/8] %v2501_v60, 128  ;;  %1843 = vmatprep.subr.bf16.mxu1 %v2396_v22  ;;  %v1457_v22 = vld [vmem:[%s2798_s4] sm:$0xff] }
  0x7d   :  { %891 = vxpose.xlu1.c.b16.cont [6/8] %v2504_v61, 128  ;;  %1780 = vmatpush3.bf16.msra.mxu0 %v2392_v21 }
  0x7e   :  { %1781 = vmatprep.subr.bf16.mxu0 %v2403_v24 }
  0x7f   :  { %1844 = vmatpush3.bf16.msra.mxu1 %v2400_v23 }
  0x80   :  { %908 = vxpose.xlu0.c.b16.cont [7/8] %v2515_v32, 128  ;;  %1845 = vmatprep.subr.bf16.mxu1 %v2410_v26  ;;  %v1458_v26 = vsub.f32 1.0, %v1457_v22 }
  0x81   :  { %892 = vxpose.xlu1.c.b16.cont [7/8] %v2518_v33, 128  ;;  %1782 = vmatpush3.bf16.msra.mxu0 %v2406_v25  ;;  %v2255_v25 = vmov 0  }
  0x82   :  { %1783 = vmatprep.subr.bf16.mxu0 %v2417_v28 }
  0x83   :  { %1846 = vmatpush3.bf16.msra.mxu1 %v2414_v27 }
  0x84   :  { %909 = vxpose.xlu0.c.b16.end [8/8] %v2529_v38, 128  ;;  %1847 = vmatprep.subr.bf16.mxu1 %v2424_v30 }
  0x85   :  { %893 = vxpose.xlu1.c.b16.end [8/8] %v2532_v39, 128  ;;  %1784 = vmatpush3.bf16.msra.mxu0 %v2420_v29 }
  0x86   :  { %1897 = vmatprep.subr.bf16.mxu0 %v2432_v36 }
  0x87   :  { %1848 = vmatpush3.bf16.msra.mxu1 %v2428_v31 }
  0x88   :  { %934 = vxpose.xlu0.c.b16.start [1/8] %v2439_v42, 128  ;;  %1961 = vmatprep.subr.bf16.mxu1 %v2439_v42 }
  0x89   :  { %918 = vxpose.xlu1.c.b16.start [1/8] %v2442_v43, 128 }
  0x8c   :  { %935 = vxpose.xlu0.c.b16.cont [2/8] %v2452_v46, 128 }
  0x8d   :  { %919 = vxpose.xlu1.c.b16.cont [2/8] %v2456_v47, 128 }
  0x8e   :  { %v846_v0 = vpop.trf.xlu0 }
  0x8f   :  { %v830_v1 = vpop.trf.xlu1  ;;  %982 = vmatprep.mubr.bf16.mxu0 %v846_v0 }
  0x90   :  { %983 = vmatmul.mubr.bf16.vlgmr.msra.gmra.mrb[8].mxu0 %v830_v1  ;;  %936 = vxpose.xlu0.c.b16.cont [3/8] %v2466_v50, 128 }
  0x91   :  { %1898 = vmatpush3.bf16.msra.mxu0 %v2435_v37  ;;  %920 = vxpose.xlu1.c.b16.cont [3/8] %v2470_v51, 128 }
  0x92   :  { %v847_v2 = vpop.trf.xlu0  ;;  %1899 = vmatprep.subr.bf16.mxu0 %v2445_v44 }
  0x93   :  { %v831_v3 = vpop.trf.xlu1  ;;  %990 = vmatprep.mubr.bf16.mxu0 %v847_v2 }
  0x94   :  { %937 = vxpose.xlu0.c.b16.cont [4/8] %v2825_v4, 128 }
  0x95   :  { %1900 = vmatpush3.bf16.msra.mxu0 %v2448_v45  ;;  %921 = vxpose.xlu1.c.b16.cont [4/8] %v2826_v6, 128 }
  0x96   :  { %v848_v5 = vpop.trf.xlu0  ;;  %1901 = vmatprep.subr.bf16.mxu0 %v2459_v48 }
  0x97   :  { %v832_v7 = vpop.trf.xlu1 }
  0x98   :  { %991 = vmatmul.mubr.bf16.gmra.mrb[12].mxu0 %v831_v3  ;;  %938 = vxpose.xlu0.c.b16.cont [5/8] %v2827_v8, 128 }
  0x99   :  { %998 = vmatprep.mubr.bf16.mxu0 %v848_v5  ;;  %1902 = vmatpush3.bf16.msra.mxu0 %v2462_v49 }
  0x9a   :  { %v849_v9 = vpop.trf.xlu0  ;;  %922 = vxpose.xlu1.c.b16.cont [5/8] %v2828_v10, 128  ;;  %1903 = vmatprep.subr.bf16.mxu0 %v2473_v52 }
  0x9b   :  { %v833_v11 = vpop.trf.xlu1 }
  0x9c   :  { %939 = vxpose.xlu0.c.b16.cont [6/8] %v2829_v12, 128 }
  0x9d   :  { %1904 = vmatpush3.bf16.msra.mxu0 %v2476_v53 }
  0x9e   :  { %v850_v13 = vpop.trf.xlu0  ;;  %923 = vxpose.xlu1.c.b16.cont [6/8] %v2830_v14, 128  ;;  %1905 = vmatprep.subr.bf16.mxu0 %v2487_v56 }
  0x9f   :  { %v834_v15 = vpop.trf.xlu1 }
  0xa0   :  { %999 = vmatmul.mubr.bf16.gmra.mrb[16].mxu0 %v832_v7  ;;  %940 = vxpose.xlu0.c.b16.cont [7/8] %v2831_v16, 128 }
  0xa1   :  { %1006 = vmatprep.mubr.bf16.mxu0 %v849_v9  ;;  %1906 = vmatpush3.bf16.msra.mxu0 %v2490_v57 }
  0xa2   :  { %v851_v17 = vpop.trf.xlu0  ;;  %924 = vxpose.xlu1.c.b16.cont [7/8] %v2832_v18, 128  ;;  %1907 = vmatprep.subr.bf16.mxu0 %v2501_v60 }
  0xa3   :  { %v835_v19 = vpop.trf.xlu1 }
  0xa4   :  { %941 = vxpose.xlu0.c.b16.end [8/8] %v2536_v40, 128 }
  0xa5   :  { %1908 = vmatpush3.bf16.msra.mxu0 %v2504_v61 }
  0xa6   :  { %v852_v20 = vpop.trf.xlu0  ;;  %925 = vxpose.xlu1.c.b16.end [8/8] %v2540_v59, 128  ;;  %1909 = vmatprep.subr.bf16.mxu0 %v2515_v32 }
  0xa7   :  { %v836_v21 = vpop.trf.xlu1 }
  0xa8   :  { %1007 = vmatmul.mubr.bf16.gmra.mrb[20].mxu0 %v833_v11 }
  0xa9   :  { %1014 = vmatprep.mubr.bf16.mxu0 %v850_v13  ;;  %1910 = vmatpush3.bf16.msra.mxu0 %v2518_v33 }
  0xaa   :  { %v853_v23 = vpop.trf.xlu0  ;;  %2122 = vset.pattern.permute.xlu1 %v2255_v25  ;;  %1911 = vmatprep.subr.bf16.mxu0 %v2529_v38 }
  0xab   :  { %v837_v24 = vpop.trf.xlu1  ;;  %1467 = vperm.xlu1 %2122, %v1457_v22  }
  0xad   :  { %2121 = vset.pattern.permute.xlu0 %v2255_v25  ;;  %1912 = vmatpush3.bf16.msra.mxu0 %v2532_v39 }
  0xae   :  { %v878_v27 = vpop.trf.xlu0  ;;  %1461 = vperm.xlu0 %2121, %v1458_v26  }
  0xaf   :  { %1079 = vmatprep.mubr.bf16.mxu1 %v878_v27  ;;  %v862_v28 = vpop.trf.xlu1 }
  0xb0   :  { %1015 = vmatmul.mubr.bf16.gmra.mrb[24].mxu0 %v834_v15  ;;  %1080 = vmatmul.mubr.bf16.vlgmr.msra.gmra.mrb[8].mxu1 %v862_v28 }
  0xb1   :  { %1022 = vmatprep.mubr.bf16.mxu0 %v851_v17  ;;  %1962 = vmatpush3.bf16.msra.mxu1 %v2442_v43 }
  0xb2   :  { %v879_v29 = vpop.trf.xlu0  ;;  %1963 = vmatprep.subr.bf16.mxu1 %v2452_v46 }
  0xb3   :  { %1087 = vmatprep.mubr.bf16.mxu1 %v879_v29  ;;  %v863_v30 = vpop.trf.xlu1 }
  0xb5   :  { %1964 = vmatpush3.bf16.msra.mxu1 %v2456_v47 }
  0xb6   :  { %v880_v31 = vpop.trf.xlu0  ;;  %1965 = vmatprep.subr.bf16.mxu1 %v2466_v50 }
  0xb7   :  { %v864_v36 = vpop.trf.xlu1 }
  0xb8   :  { %1023 = vmatmul.mubr.bf16.gmra.mrb[28].mxu0 %v835_v19  ;;  %1088 = vmatmul.mubr.bf16.gmra.mrb[12].mxu1 %v863_v30 }
  0xb9   :  { %1030 = vmatprep.mubr.bf16.mxu0 %v852_v20  ;;  %1095 = vmatprep.mubr.bf16.mxu1 %v880_v31 }
  0xba   :  { %v881_v37 = vpop.trf.xlu0  ;;  %1966 = vmatpush3.bf16.msra.mxu1 %v2470_v51 }
  0xbb   :  { %1967 = vmatprep.subr.bf16.mxu1 %v2825_v4  ;;  %v865_v42 = vpop.trf.xlu1 }
  0xbe   :  { %v882_v43 = vpop.trf.xlu0  ;;  %1968 = vmatpush3.bf16.msra.mxu1 %v2826_v6 }
  0xbf   :  { %1969 = vmatprep.subr.bf16.mxu1 %v2827_v8  ;;  %v866_v44 = vpop.trf.xlu1 }
  0xc0   :  { %1031 = vmatmul.mubr.bf16.gmra.mrb[32].mxu0 %v836_v21  ;;  %1096 = vmatmul.mubr.bf16.gmra.mrb[16].mxu1 %v864_v36 }
  0xc1   :  { %1038 = vmatprep.mubr.bf16.mxu0 %v853_v23  ;;  %1103 = vmatprep.mubr.bf16.mxu1 %v881_v37 }
  0xc2   :  { %v883_v45 = vpop.trf.xlu0  ;;  %1970 = vmatpush3.bf16.msra.mxu1 %v2828_v10 }
  0xc3   :  { %1971 = vmatprep.subr.bf16.mxu1 %v2829_v12  ;;  %v867_v46 = vpop.trf.xlu1 }
  0xc6   :  { %v884_v47 = vpop.trf.xlu0  ;;  %1972 = vmatpush3.bf16.msra.mxu1 %v2830_v14 }
  0xc7   :  { %1973 = vmatprep.subr.bf16.mxu1 %v2831_v16  ;;  %v868_v48 = vpop.trf.xlu1 }
  0xc8   :  { %1039 = vmatmul.mubr.bf16.gmra.mrb[36].mxu0 %v837_v24  ;;  %1104 = vmatmul.mubr.bf16.gmra.mrb[20].mxu1 %v865_v42 }
  0xc9   :  { %1111 = vmatprep.mubr.bf16.mxu1 %v882_v43 }
  0xca   :  { %v885_v49 = vpop.trf.xlu0  ;;  %1974 = vmatpush3.bf16.msra.mxu1 %v2832_v18 }
  0xcb   :  { %1975 = vmatprep.subr.bf16.mxu1 %v2536_v40  ;;  %v869_v50 = vpop.trf.xlu1 }
  0xce   :  { %v910_v51 = vpop.trf.xlu0  ;;  %1976 = vmatpush3.bf16.msra.mxu1 %v2540_v59 }
  0xcf   :  { %1176 = vmatprep.mubr.bf16.mxu0 %v910_v51  ;;  %v894_v52 = vpop.trf.xlu1 }
  0xd0   :  { %1112 = vmatmul.mubr.bf16.gmra.mrb[24].mxu1 %v866_v44  ;;  %1177 = vmatmul.mubr.bf16.vlgmr.msra.gmra.mrb[40].mxu0 %v894_v52 }
  0xd1   :  { %1119 = vmatprep.mubr.bf16.mxu1 %v883_v45 }
  0xd2   :  { %v911_v53 = vpop.trf.xlu0 }
  0xd3   :  { %1184 = vmatprep.mubr.bf16.mxu0 %v911_v53  ;;  %v895_v54 = vpop.trf.xlu1 }
  0xd6   :  { %v912_v55 = vpop.trf.xlu0 }
  0xd7   :  { %v896_v56 = vpop.trf.xlu1 }
  0xd8   :  { %1120 = vmatmul.mubr.bf16.gmra.mrb[28].mxu1 %v867_v46  ;;  %1185 = vmatmul.mubr.bf16.gmra.mrb[44].mxu0 %v895_v54 }
  0xd9   :  { %1127 = vmatprep.mubr.bf16.mxu1 %v884_v47  ;;  %1192 = vmatprep.mubr.bf16.mxu0 %v912_v55 }
  0xda   :  { %v913_v57 = vpop.trf.xlu0 }
  0xdb   :  { %v897_v58 = vpop.trf.xlu1 }
  0xde   :  { %v914_v60 = vpop.trf.xlu0 }
  0xdf   :  { %v898_v61 = vpop.trf.xlu1 }
  0xe0   :  { %1128 = vmatmul.mubr.bf16.gmra.mrb[32].mxu1 %v868_v48  ;;  %1193 = vmatmul.mubr.bf16.gmra.mrb[48].mxu0 %v896_v56  ;;  %v1678_v48 = vld [vmem:[%s2796_s2] ss:$0 sm:$0xff] }
  0xe1   :  { %1135 = vmatprep.mubr.bf16.mxu1 %v885_v49  ;;  %1200 = vmatprep.mubr.bf16.mxu0 %v913_v57  ;;  %v1679_v57 = vld [vmem:[%s2797_s3] ss:$0 sm:$0xff] }
  0xe2   :  { %v915_v59 = vpop.trf.xlu0 }
  0xe3   :  { %v899_v62 = vpop.trf.xlu1 }
  0xe6   :  { %v916_v63 = vpop.trf.xlu0 }
  0xe7   :  { %v900_v32 = vpop.trf.xlu1 }
  0xe8   :  { %1136 = vmatmul.mubr.bf16.gmra.mrb[36].mxu1 %v869_v50  ;;  %1201 = vmatmul.mubr.bf16.gmra.mrb[52].mxu0 %v897_v58 }
  0xe9   :  { %1208 = vmatprep.mubr.bf16.mxu0 %v914_v60 }
  0xea   :  { %v917_v33 = vpop.trf.xlu0 }
  0xeb   :  { %v901_v34 = vpop.trf.xlu1 }
  0xee   :  { %v942_v35 = vpop.trf.xlu0 }
  0xef   :  { %1273 = vmatprep.mubr.bf16.mxu1 %v942_v35 }
  0xf0   :  { %v926_v38 = vpop.trf.xlu1  ;;  %1209 = vmatmul.mubr.bf16.gmra.mrb[56].mxu0 %v898_v61 }
  0xf1   :  { %1274 = vmatmul.mubr.bf16.vlgmr.msra.gmra.mrb[40].mxu1 %v926_v38  ;;  %1216 = vmatprep.mubr.bf16.mxu0 %v915_v59 }
  0xf2   :  { %v943_v39 = vpop.trf.xlu0 }
  0xf3   :  { %1281 = vmatprep.mubr.bf16.mxu1 %v943_v39 }
  0xf4   :  { %v927_v40 = vpop.trf.xlu1 }
  0xf6   :  { %v944_v41 = vpop.trf.xlu0 }
  0xf8   :  { %1217 = vmatmul.mubr.bf16.gmra.mrb[60].mxu0 %v899_v62  ;;  %v928_v0 = vpop.trf.xlu1 }
  0xf9   :  { %1282 = vmatmul.mubr.bf16.gmra.mrb[44].mxu1 %v927_v40  ;;  %1224 = vmatprep.mubr.bf16.mxu0 %v916_v63  ;;  %v2256_v63 = vmov 0.2  }
  0xfa   :  { %1289 = vmatprep.mubr.bf16.mxu1 %v944_v41  ;;  %v945_v1 = vpop.trf.xlu0 }
  0xfc   :  { %v929_v2 = vpop.trf.xlu1 }
  0xfe   :  { %v946_v3 = vpop.trf.xlu0 }
 0x100   :  { %1225 = vmatmul.mubr.bf16.gmra.mrb[64].mxu0 %v900_v32  ;;  %v930_v4 = vpop.trf.xlu1 }
 0x101   :  { %1290 = vmatmul.mubr.bf16.gmra.mrb[48].mxu1 %v928_v0  ;;  %1232 = vmatprep.mubr.bf16.mxu0 %v917_v33 }
 0x102   :  { %1297 = vmatprep.mubr.bf16.mxu1 %v945_v1  ;;  %v947_v5 = vpop.trf.xlu0 }
 0x104   :  { %v931_v6 = vpop.trf.xlu1 }
 0x106   :  { %v948_v7 = vpop.trf.xlu0 }
 0x108   :  { %1233 = vmatmul.mubr.bf16.gmra.mrb[68].mxu0 %v901_v34  ;;  %v932_v9 = vpop.trf.xlu1  ;;  %v2257_v34 = vmov 0.0|0.0  }
 0x109   :  { %1298 = vmatmul.mubr.bf16.gmra.mrb[52].mxu1 %v929_v2  ;;  %2077 = vmatprep.subr.bf16.mxu0 %v2257_v34 }
 0x10a   :  { %1305 = vmatprep.mubr.bf16.mxu1 %v946_v3  ;;  %v949_v11 = vpop.trf.xlu0 }
 0x10c   :  { %v933_v24 = vpop.trf.xlu1 }
 0x111   :  { %1306 = vmatmul.mubr.bf16.gmra.mrb[56].mxu1 %v930_v4 }
 0x112   :  { %1313 = vmatprep.mubr.bf16.mxu1 %v947_v5 }
 0x119   :  { %1314 = vmatmul.mubr.bf16.gmra.mrb[60].mxu1 %v931_v6 }
 0x11a   :  { %1321 = vmatprep.mubr.bf16.mxu1 %v948_v7 }
 0x11b   :  { %v1697_v8 = vpop.f32.mrb[0].mxu0 }
 0x11c   :  { %v1698_v10 = vpop.f32.mrb[1].mxu0 }
 0x11d   :  { %v1699_v12 = vadd.f32 %v1698_v10, %v1697_v8  ;;  %v1700_v13 = vpop.f32.mrb[2].mxu0  ;;  %v1719_v14 = vpop.f32.mrb[0].mxu1 }
 0x11e   :  { %v1701_v15 = vpop.f32.mrb[3].mxu0  ;;  %v1720_v17 = vpop.f32.mrb[1].mxu1 }
 0x11f   :  { %v1702_v16 = vadd.f32 %v1701_v15, %v1700_v13  ;;  %v1721_v18 = vadd.f32 %v1720_v17, %v1719_v14  ;;  %v1722_v19 = vpop.f32.mrb[2].mxu1 }
 0x120   :  { %v1723_v20 = vpop.f32.mrb[3].mxu1 }
 0x121   :  { %1322 = vmatmul.mubr.bf16.gmra.mrb[64].mxu1 %v932_v9  ;;  %v714_v21 = vadd.f32 %v1721_v18, %v1699_v12  ;;  %v1724_v22 = vadd.f32 %v1723_v20, %v1722_v19 }
 0x122   :  { %1329 = vmatprep.mubr.bf16.mxu1 %v949_v11 }
 0x123   :  { %v717_v23 = vadd.f32 %v1724_v22, %v1702_v16 }
 0x129   :  { %1330 = vmatmul.mubr.bf16.gmra.mrb[68].mxu1 %v933_v24 }
 0x12a   :  { %v1468_v52 = vpop.permute.xlu1 %1467 }
 0x12d   :  { %v1462_v49 = vpop.permute.xlu0 %1461 }
 0x13b   :  { %v1741_v25 = vpop.f32.mrb[4].mxu0 }
 0x13c   :  { %v1742_v26 = vpop.f32.mrb[5].mxu0 }
 0x13d   :  { %v1743_v27 = vadd.f32 %v1742_v26, %v1741_v25  ;;  %v1744_v28 = vpop.f32.mrb[6].mxu0  ;;  %v1763_v29 = vpop.f32.mrb[4].mxu1 }
 0x13e   :  { %v1745_v30 = vpop.f32.mrb[7].mxu0  ;;  %v1764_v37 = vpop.f32.mrb[5].mxu1 }
 0x13f   :  { %v755_v31 = vadd.f32 %v1743_v27, %v714_v21  ;;  %v1746_v36 = vadd.f32 %v1745_v30, %v1744_v28  ;;  %v1765_v42 = vadd.f32 %v1764_v37, %v1763_v29  ;;  %v1766_v43 = vpop.f32.mrb[6].mxu1 }
 0x140   :  { %v1767_v45 = vpop.f32.mrb[7].mxu1 }
 0x141   :  { %v758_v44 = vadd.f32 %v1746_v36, %v717_v23  ;;  %v796_v46 = vadd.f32 %v1765_v42, %v755_v31  ;;  %v1768_v47 = vadd.f32 %v1767_v45, %v1766_v43  ;;  %v2259_v31 = vmov 0.0  }
 0x142   :  { %2074 = vmatprep.mubr.msk.f32.mxu0 %vm2258_vm3, %v2259_v31 }
 0x143   :  { %v1384_v50 = vadd.f32 %v1678_v48, %v796_v46  ;;  %v799_v51 = vadd.f32 %v1768_v47, %v758_v44 }
 0x145   :  { %v1385_v53 = vadd.f32 %v1678_v48, %v799_v51  ;;  %v1464_v54 = vmul.f32 %v1462_v49, %v1384_v50  ;;  %v1388_v55 = vmul.f32 0.2, %v1384_v50  ;;  %vm1386_vm0 = vcmp.gt.f32.partialorder %v1384_v50, 0.0 }
 0x147   :  { %v1470_v56 = vmul.f32 %v1468_v52, %v1385_v53  ;;  %vm1387_vm1 = vcmp.gt.f32.partialorder %v1385_v53, 0.0  ;;  %v1389_v58 = vmul.f32 0.2, %v1385_v53  ;;  %v1390_v59 = vsel %vm1386_vm0, %v1384_v50, %v1388_v55 }
 0x148   :  { %v1398_v33 = vmul.f32 %v1679_v57, %v1390_v59 }
 0x149   :  { %v1471_v60 = vadd.f32 %v1470_v56, %v1464_v54  ;;  %v1391_v61 = vsel %vm1387_vm1, %v1385_v53, %v1389_v58 }
 0x14a   :  { %v1399_v62 = vmul.f32 %v1679_v57, %v1391_v61 }
 0x14b   :  { %vm1472_vm2 = vcmp.gt.f32.partialorder %v1471_v60, 0.0 }
 0x14c   :  { %v1473_v32 = vsel %vm1472_vm2, 1.0, %v2256_v63  ;;  %1402 = vadd.xlane.f32.xlu0 %v1399_v62 }
 0x14d   :  { %v2650_v35 = vmul.f32 %v1679_v57, %v1473_v32 }
 0x150   :  { %1400 = vadd.xlane.f32.xlu0 %v1398_v33 }
 0x163   :  { %v1785_v38 = vpop.f32.mrb[8].mxu0 }
 0x164   :  { %v1786_v39 = vpop.f32.mrb[9].mxu0 }
 0x165   :  { %v1787_v40 = vadd.f32 %v1786_v39, %v1785_v38  ;;  %v1788_v41 = vpop.f32.mrb[10].mxu0 }
 0x166   :  { %v1789_v0 = vpop.f32.mrb[11].mxu0 }
 0x167   :  { %v1790_v1 = vadd.f32 %v1789_v0, %v1788_v41 }
 0x16b   :  { %v1791_v2 = vpop.f32.mrb[12].mxu0 }
 0x16c   :  { %v1792_v3 = vpop.f32.mrb[13].mxu0 }
 0x16d   :  { %v1793_v4 = vadd.f32 %v1792_v3, %v1791_v2  ;;  %v1794_v5 = vpop.f32.mrb[14].mxu0 }
 0x16e   :  { %v1795_v6 = vpop.f32.mrb[15].mxu0 }
 0x16f   :  { %v1796_v7 = vadd.f32 %v1795_v6, %v1794_v5 }
 0x173   :  { %v1797_v8 = vpop.f32.mrb[16].mxu0 }
 0x174   :  { %v1798_v9 = vpop.f32.mrb[17].mxu0 }
 0x175   :  { %v1799_v10 = vadd.f32 %v1798_v9, %v1797_v8  ;;  %v1800_v11 = vpop.f32.mrb[18].mxu0 }
 0x176   :  { %v1801_v12 = vpop.f32.mrb[19].mxu0 }
 0x177   :  { %v1802_v13 = vadd.f32 %v1801_v12, %v1800_v11 }
 0x17b   :  { %v1803_v14 = vpop.f32.mrb[20].mxu0 }
 0x17c   :  { %v1804_v15 = vpop.f32.mrb[21].mxu0 }
 0x17d   :  { %v1805_v16 = vadd.f32 %v1804_v15, %v1803_v14  ;;  %v1806_v17 = vpop.f32.mrb[22].mxu0 }
 0x17e   :  { %v1807_v18 = vpop.f32.mrb[23].mxu0 }
 0x17f   :  { %v1808_v19 = vadd.f32 %v1807_v18, %v1806_v17 }
 0x183   :  { %v1809_v20 = vpop.f32.mrb[24].mxu0  ;;  %v1849_v22 = vpop.f32.mrb[8].mxu1 }
 0x184   :  { %v1810_v21 = vpop.f32.mrb[25].mxu0  ;;  %v1850_v25 = vpop.f32.mrb[9].mxu1 }
 0x185   :  { %v2652_v23 = vadd.f32 %v1810_v21, %v1809_v20  ;;  %v1812_v24 = vpop.f32.mrb[26].mxu0  ;;  %v1851_v27 = vadd.f32 %v1850_v25, %v1849_v22  ;;  %v1852_v28 = vpop.f32.mrb[10].mxu1 }
 0x186   :  { %v1813_v26 = vpop.f32.mrb[27].mxu0  ;;  %v1853_v30 = vpop.f32.mrb[11].mxu1 }
 0x187   :  { %v2654_v29 = vadd.f32 %v1813_v26, %v1812_v24  ;;  %v1082_v36 = vadd.f32 %v1851_v27, %v1787_v40  ;;  %v1854_v37 = vadd.f32 %v1853_v30, %v1852_v28 }
 0x189   :  { %v1085_v42 = vadd.f32 %v1854_v37, %v1790_v1 }
 0x18b   :  { %v1815_v43 = vpop.f32.mrb[28].mxu0  ;;  %v1855_v45 = vpop.f32.mrb[12].mxu1 }
 0x18c   :  { %v1816_v44 = vpop.f32.mrb[29].mxu0  ;;  %v1856_v48 = vpop.f32.mrb[13].mxu1 }
 0x18d   :  { %v2656_v46 = vadd.f32 %v1816_v44, %v1815_v43  ;;  %v1818_v47 = vpop.f32.mrb[30].mxu0  ;;  %v1857_v50 = vadd.f32 %v1856_v48, %v1855_v45  ;;  %v1858_v51 = vpop.f32.mrb[14].mxu1 }
 0x18e   :  { %v1819_v49 = vpop.f32.mrb[31].mxu0  ;;  %v1859_v53 = vpop.f32.mrb[15].mxu1 }
 0x18f   :  { %v2658_v52 = vadd.f32 %v1819_v49, %v1818_v47  ;;  %v1090_v54 = vadd.f32 %v1857_v50, %v1793_v4  ;;  %v1860_v55 = vadd.f32 %v1859_v53, %v1858_v51 }
 0x191   :  { %v1093_v56 = vadd.f32 %v1860_v55, %v1796_v7 }
 0x193   :  { %v1821_v57 = vpop.f32.mrb[32].mxu0  ;;  %v1861_v60 = vpop.f32.mrb[16].mxu1 }
 0x194   :  { %v1822_v58 = vpop.f32.mrb[33].mxu0  ;;  %v1862_v62 = vpop.f32.mrb[17].mxu1 }
 0x195   :  { %v2660_v61 = vadd.f32 %v1822_v58, %v1821_v57  ;;  %v1824_v59 = vpop.f32.mrb[34].mxu0  ;;  %v1863_v32 = vadd.f32 %v1862_v62, %v1861_v60  ;;  %v1864_v33 = vpop.f32.mrb[18].mxu1 }
 0x196   :  { %v1825_v63 = vpop.f32.mrb[35].mxu0  ;;  %v1865_v39 = vpop.f32.mrb[19].mxu1 }
 0x197   :  { %v2662_v38 = vadd.f32 %v1825_v63, %v1824_v59  ;;  %v1098_v40 = vadd.f32 %v1863_v32, %v1799_v10  ;;  %v1866_v41 = vadd.f32 %v1865_v39, %v1864_v33 }
 0x199   :  { %v1101_v0 = vadd.f32 %v1866_v41, %v1802_v13 }
 0x19b   :  { %v1827_v1 = vpop.f32.mrb[36].mxu0  ;;  %v1867_v3 = vpop.f32.mrb[20].mxu1 }
 0x19c   :  { %v1828_v2 = vpop.f32.mrb[37].mxu0  ;;  %v1868_v6 = vpop.f32.mrb[21].mxu1 }
 0x19d   :  { %v2664_v4 = vadd.f32 %v1828_v2, %v1827_v1  ;;  %v1830_v5 = vpop.f32.mrb[38].mxu0  ;;  %v1869_v8 = vadd.f32 %v1868_v6, %v1867_v3  ;;  %v1870_v9 = vpop.f32.mrb[22].mxu1 }
 0x19e   :  { %v1831_v7 = vpop.f32.mrb[39].mxu0  ;;  %v1871_v12 = vpop.f32.mrb[23].mxu1 }
 0x19f   :  { %v2666_v11 = vadd.f32 %v1831_v7, %v1830_v5  ;;  %v1106_v14 = vadd.f32 %v1869_v8, %v1805_v16  ;;  %v1872_v15 = vadd.f32 %v1871_v12, %v1870_v9 }
 0x1a1   :  { %v2668_v17 = vadd.f32 %v1872_v15, %v1808_v19 }
 0x1a3   :  { %v1873_v10 = vpop.f32.mrb[24].mxu1  ;;  %v1913_v18 = vpop.f32.mrb[40].mxu0 }
 0x1a4   :  { %v1874_v13 = vpop.f32.mrb[25].mxu1  ;;  %v1914_v20 = vpop.f32.mrb[41].mxu0 }
 0x1a5   :  { %v1875_v21 = vadd.f32 %v1874_v13, %v1873_v10  ;;  %v1915_v22 = vadd.f32 %v1914_v20, %v1913_v18  ;;  %v1876_v24 = vpop.f32.mrb[26].mxu1  ;;  %v1916_v25 = vpop.f32.mrb[42].mxu0 }
 0x1a6   :  { %v1877_v26 = vpop.f32.mrb[27].mxu1  ;;  %v1917_v27 = vpop.f32.mrb[43].mxu0 }
 0x1a7   :  { %v2671_v28 = vadd.f32 %v1875_v21, %v2652_v23  ;;  %v2673_v30 = vadd.f32 %v1915_v22, %v1082_v36  ;;  %v1878_v31 = vadd.f32 %v1877_v26, %v1876_v24  ;;  %v1918_v16 = vadd.f32 %v1917_v27, %v1916_v25 }
 0x1a9   :  { %v2676_v19 = vadd.f32 %v1878_v31, %v2654_v29  ;;  %v2678_v37 = vadd.f32 %v1918_v16, %v1085_v42 }
 0x1ab   :  { %v1879_v43 = vpop.f32.mrb[28].mxu1  ;;  %v1919_v44 = vpop.f32.mrb[44].mxu0 }
 0x1ac   :  { %v1880_v45 = vpop.f32.mrb[29].mxu1  ;;  %v1920_v47 = vpop.f32.mrb[45].mxu0 }
 0x1ad   :  { %v1881_v48 = vadd.f32 %v1880_v45, %v1879_v43  ;;  %v1921_v49 = vadd.f32 %v1920_v47, %v1919_v44  ;;  %v1882_v50 = vpop.f32.mrb[30].mxu1  ;;  %v1922_v51 = vpop.f32.mrb[46].mxu0 }
 0x1ae   :  { %v1883_v53 = vpop.f32.mrb[31].mxu1  ;;  %v1923_v23 = vpop.f32.mrb[47].mxu0 }
 0x1af   :  { %v2681_v36 = vadd.f32 %v1881_v48, %v2656_v46  ;;  %v2683_v55 = vadd.f32 %v1921_v49, %v1090_v54  ;;  %v1884_v57 = vadd.f32 %v1883_v53, %v1882_v50  ;;  %v1924_v29 = vadd.f32 %v1923_v23, %v1922_v51 }
 0x1b1   :  { %v2686_v42 = vadd.f32 %v1884_v57, %v2658_v52  ;;  %v2688_v58 = vadd.f32 %v1924_v29, %v1093_v56 }
 0x1b3   :  { %v1885_v60 = vpop.f32.mrb[32].mxu1  ;;  %v1925_v59 = vpop.f32.mrb[48].mxu0 }
 0x1b4   :  { %v1886_v62 = vpop.f32.mrb[33].mxu1  ;;  %v1926_v63 = vpop.f32.mrb[49].mxu0 }
 0x1b5   :  { %v1887_v32 = vadd.f32 %v1886_v62, %v1885_v60  ;;  %v1927_v33 = vadd.f32 %v1926_v63, %v1925_v59  ;;  %v1888_v39 = vpop.f32.mrb[34].mxu1  ;;  %v1928_v41 = vpop.f32.mrb[50].mxu0 }
 0x1b6   :  { %v1889_v1 = vpop.f32.mrb[35].mxu1  ;;  %v1929_v46 = vpop.f32.mrb[51].mxu0 }
 0x1b7   :  { %v2691_v54 = vadd.f32 %v1887_v32, %v2660_v61  ;;  %v2693_v2 = vadd.f32 %v1927_v33, %v1098_v40  ;;  %v1890_v3 = vadd.f32 %v1889_v1, %v1888_v39  ;;  %v1930_v52 = vadd.f32 %v1929_v46, %v1928_v41 }
 0x1b8   :  { %v1407_v41 = vlaneseq }
 0x1b9   :  { %v2696_v56 = vadd.f32 %v1890_v3, %v2662_v38  ;;  %v2698_v5 = vadd.f32 %v1930_v52, %v1101_v0 }
 0x1bb   :  { %v1891_v6 = vpop.f32.mrb[36].mxu1  ;;  %v1931_v7 = vpop.f32.mrb[52].mxu0 }
 0x1bc   :  { %v1892_v8 = vpop.f32.mrb[37].mxu1  ;;  %v1932_v9 = vpop.f32.mrb[53].mxu0 }
 0x1bd   :  { %v1893_v12 = vadd.f32 %v1892_v8, %v1891_v6  ;;  %v1933_v15 = vadd.f32 %v1932_v9, %v1931_v7  ;;  %v1894_v10 = vpop.f32.mrb[38].mxu1  ;;  %v1934_v18 = vpop.f32.mrb[54].mxu0 }
 0x1be   :  { %v1895_v13 = vpop.f32.mrb[39].mxu1  ;;  %v1935_v61 = vpop.f32.mrb[55].mxu0 }
 0x1bf   :  { %v2701_v40 = vadd.f32 %v1893_v12, %v2664_v4  ;;  %v2703_v20 = vadd.f32 %v1933_v15, %v1106_v14  ;;  %v1896_v21 = vadd.f32 %v1895_v13, %v1894_v10  ;;  %v1936_v38 = vadd.f32 %v1935_v61, %v1934_v18 }
 0x1c0   :  { %v2729_v15 = vshrl.u32 %v1407_v41, 7  ;;  %v1404_v13 = vstv %s2799_s5 }
 0x1c1   :  { %v2706_v0 = vadd.f32 %v1896_v21, %v2666_v11  ;;  %v2709_v22 = vadd.f32 %v1936_v38, %v2668_v17 }
 0x1c2   :  { %vm1409_vm4 = vcmp.lt.s32.totalorder %v2729_v15, 2 }
 0x1c3   :  { %v1937_v24 = vpop.f32.mrb[56].mxu0 }
 0x1c4   :  { %v1977_v25 = vpop.f32.mrb[40].mxu1  ;;  %v1938_v26 = vpop.f32.mrb[57].mxu0 }
 0x1c5   :  { %v1978_v27 = vpop.f32.mrb[41].mxu1  ;;  %v1939_v31 = vadd.f32 %v1938_v26, %v1937_v24  ;;  %v1940_v43 = vpop.f32.mrb[58].mxu0 }
 0x1c6   :  { %v1979_v16 = vadd.f32 %v1978_v27, %v1977_v25  ;;  %v1980_v44 = vpop.f32.mrb[42].mxu1  ;;  %v1941_v4 = vpop.f32.mrb[59].mxu0 }
 0x1c7   :  { %v1981_v45 = vpop.f32.mrb[43].mxu1  ;;  %v2712_v14 = vadd.f32 %v1939_v31, %v2671_v28  ;;  %v1942_v11 = vadd.f32 %v1941_v4, %v1940_v43 }
 0x1c8   :  { %v1276_v47 = vadd.f32 %v1979_v16, %v2673_v30  ;;  %v1982_v48 = vadd.f32 %v1981_v45, %v1980_v44 }
 0x1c9   :  { %v2716_v17 = vadd.f32 %v1942_v11, %v2676_v19 }
 0x1ca   :  { %v1279_v49 = vadd.f32 %v1982_v48, %v2678_v37 }
 0x1cb   :  { %v1943_v51 = vpop.f32.mrb[60].mxu0 }
 0x1cc   :  { %v2078_v50 = vpack.c.bf16 %v1279_v49, %v1276_v47  ;;  %v1983_v53 = vpop.f32.mrb[44].mxu1  ;;  %v1944_v23 = vpop.f32.mrb[61].mxu0 }
 0x1cd   :  { %v1984_v57 = vpop.f32.mrb[45].mxu1  ;;  %v1945_v29 = vadd.f32 %v1944_v23, %v1943_v51  ;;  %v1946_v59 = vpop.f32.mrb[62].mxu0 }
 0x1ce   :  { %v1985_v60 = vadd.f32 %v1984_v57, %v1983_v53  ;;  %v1986_v62 = vpop.f32.mrb[46].mxu1  ;;  %2079 = vmatpush3.bf16.msra.mxu0 %v2078_v50  ;;  %v1947_v28 = vpop.f32.mrb[63].mxu0 }
 0x1cf   :  { %v1987_v63 = vpop.f32.mrb[47].mxu1  ;;  %2080 = vmatprep.subr.bf16.mxu0 %v2257_v34  ;;  %v2721_v30 = vadd.f32 %v1945_v29, %v2681_v36  ;;  %v1948_v37 = vadd.f32 %v1947_v28, %v1946_v59 }
 0x1d0   :  { %v1284_v19 = vadd.f32 %v1985_v60, %v2683_v55  ;;  %v1988_v32 = vadd.f32 %v1987_v63, %v1986_v62 }
 0x1d1   :  { %v2725_v33 = vadd.f32 %v1948_v37, %v2686_v42 }
 0x1d2   :  { %v1287_v39 = vadd.f32 %v1988_v32, %v2688_v58 }
 0x1d3   :  { %v1949_v46 = vpop.f32.mrb[64].mxu0 }
 0x1d4   :  { %v2081_v1 = vpack.c.bf16 %v1287_v39, %v1284_v19  ;;  %v1989_v3 = vpop.f32.mrb[48].mxu1  ;;  %v1950_v52 = vpop.f32.mrb[65].mxu0 }
 0x1d5   :  { %v1990_v6 = vpop.f32.mrb[49].mxu1  ;;  %v1951_v7 = vadd.f32 %v1950_v52, %v1949_v46  ;;  %v1952_v9 = vpop.f32.mrb[66].mxu0 }
 0x1d6   :  { %v1991_v8 = vadd.f32 %v1990_v6, %v1989_v3  ;;  %v1992_v36 = vpop.f32.mrb[50].mxu1  ;;  %2082 = vmatpush3.bf16.msra.mxu0 %v2081_v1  ;;  %v1953_v12 = vpop.f32.mrb[67].mxu0 }
 0x1d7   :  { %v1993_v55 = vpop.f32.mrb[51].mxu1  ;;  %2083 = vmatprep.subr.bf16.mxu0 %v2257_v34  ;;  %v2732_v42 = vadd.f32 %v1951_v7, %v2691_v54  ;;  %v1954_v10 = vadd.f32 %v1953_v12, %v1952_v9 }
 0x1d8   :  { %v1292_v58 = vadd.f32 %v1991_v8, %v2693_v2  ;;  %v1994_v18 = vadd.f32 %v1993_v55, %v1992_v36 }
 0x1d9   :  { %v1230_v61 = vadd.f32 %v1954_v10, %v2696_v56  ;;  %v1403_v38 = vpop.xlane.xlu0 %1402 }
 0x1da   :  { %v1295_v21 = vadd.f32 %v1994_v18, %v2698_v5  ;;  %v2745_v54 = vadd.f32 %v1404_v13, %v1403_v38 }
 0x1db   :  { %v1955_v2 = vpop.f32.mrb[68].mxu0 }
 0x1dc   :  { %v2084_v24 = vpack.c.bf16 %v1295_v21, %v1292_v58  ;;  %v1995_v25 = vpop.f32.mrb[52].mxu1  ;;  %v1956_v26 = vpop.f32.mrb[69].mxu0  ;;  %v1422_v5 = vsel %vm1409_vm4, %v2745_v54, 0.0 }
 0x1dd   :  { %v1996_v27 = vpop.f32.mrb[53].mxu1  ;;  %v1957_v31 = vadd.f32 %v1956_v26, %v1955_v2  ;;  %v1958_v56 = vpop.f32.mrb[70].mxu0  ;;  %v1423_v4 = vsel %vm1411_vm5, %v1422_v5, 0.0 }
 0x1de   :  { %v1997_v16 = vadd.f32 %v1996_v27, %v1995_v25  ;;  %v1998_v43 = vpop.f32.mrb[54].mxu1  ;;  %2085 = vmatpush3.bf16.msra.mxu0 %v2084_v24  ;;  %v1959_v44 = vpop.f32.mrb[71].mxu0  ;;  %1424 = vadd.xlane.f32.xlu0 %v1423_v4 }
 0x1df   :  { %2086 = vmatprep.subr.bf16.mxu0 %v2257_v34  ;;  %v1235_v45 = vadd.f32 %v1957_v31, %v2701_v40  ;;  %v1960_v11 = vadd.f32 %v1959_v44, %v1958_v56  ;;  %v1999_v48 = vpop.f32.mrb[55].mxu1  ;;  %v1401_v38 = vpop.xlane.xlu0 %1400 }
 0x1e0   :  { %v1300_v47 = vadd.f32 %v1997_v16, %v2703_v20  ;;  %v2000_v49 = vadd.f32 %v1999_v48, %v1998_v43 }
 0x1e1   :  { %v1238_v50 = vadd.f32 %v1960_v11, %v2706_v0 }
 0x1e2   :  { %v1303_v51 = vadd.f32 %v2000_v49, %v2709_v22 }
 0x1e4   :  { %v2001_v53 = vpop.f32.mrb[56].mxu1  ;;  %v2087_v23 = vpack.c.bf16 %v1303_v51, %v1300_v47 }
 0x1e5   :  { %v2002_v57 = vpop.f32.mrb[57].mxu1 }
 0x1e6   :  { %v2003_v29 = vadd.f32 %v2002_v57, %v2001_v53  ;;  %v2004_v60 = vpop.f32.mrb[58].mxu1  ;;  %2088 = vmatpush3.bf16.msra.mxu0 %v2087_v23 }
 0x1e7   :  { %v2005_v59 = vpop.f32.mrb[59].mxu1  ;;  %2089 = vmatprep.subr.bf16.mxu0 %v2257_v34 }
 0x1e8   :  { %v1308_v62 = vadd.f32 %v2003_v29, %v2712_v14  ;;  %v2006_v40 = vadd.f32 %v2005_v59, %v2004_v60 }
 0x1ea   :  { %v1311_v20 = vadd.f32 %v2006_v40, %v2716_v17 }
 0x1ec   :  { %v2090_v28 = vpack.c.bf16 %v1311_v20, %v1308_v62  ;;  %v2007_v63 = vpop.f32.mrb[60].mxu1 }
 0x1ed   :  { %v2008_v19 = vpop.f32.mrb[61].mxu1 }
 0x1ee   :  { %v2009_v0 = vadd.f32 %v2008_v19, %v2007_v63  ;;  %v2010_v37 = vpop.f32.mrb[62].mxu1  ;;  %2091 = vmatpush3.bf16.msra.mxu0 %v2090_v28 }
 0x1ef   :  { %v2011_v22 = vpop.f32.mrb[63].mxu1  ;;  %2092 = vmatprep.subr.bf16.mxu0 %v2257_v34 }
 0x1f0   :  { %v1316_v32 = vadd.f32 %v2009_v0, %v2721_v30  ;;  %v2012_v39 = vadd.f32 %v2011_v22, %v2010_v37 }
 0x1f2   :  { %v1319_v41 = vadd.f32 %v2012_v39, %v2725_v33 }
 0x1f4   :  { %v2093_v14 = vpack.c.bf16 %v1319_v41, %v1316_v32  ;;  %v2013_v1 = vpop.f32.mrb[64].mxu1 }
 0x1f5   :  { %v2014_v46 = vpop.f32.mrb[65].mxu1 }
 0x1f6   :  { %v2015_v3 = vadd.f32 %v2014_v46, %v2013_v1  ;;  %v2016_v52 = vpop.f32.mrb[66].mxu1  ;;  %2094 = vmatpush3.bf16.msra.mxu0 %v2093_v14 }
 0x1f7   :  { %v2017_v17 = vpop.f32.mrb[67].mxu1  ;;  %2095 = vmatprep.subr.bf16.mxu0 %v2257_v34 }
 0x1f8   :  { %v1324_v6 = vadd.f32 %v2015_v3, %v2732_v42  ;;  %v2018_v7 = vadd.f32 %v2017_v17, %v2016_v52  ;;  %v1405_v42 = vadd.f32 %v1404_v13, %v1401_v38 }
 0x1fa   :  { %v1327_v8 = vadd.f32 %v2018_v7, %v1230_v61  ;;  %v1410_v25 = vsel %vm1409_vm4, %v1405_v42, 0.0 }
 0x1fb   :  { %v1412_v26 = vsel %vm1411_vm5, %v1410_v25, 0.0 }
 0x1fc   :  { %v2096_v9 = vpack.c.bf16 %v1327_v8, %v1324_v6  ;;  %v2019_v36 = vpop.f32.mrb[68].mxu1 }
 0x1fd   :  { %v2020_v12 = vpop.f32.mrb[69].mxu1 }
 0x1fe   :  { %v2021_v30 = vadd.f32 %v2020_v12, %v2019_v36  ;;  %v2022_v55 = vpop.f32.mrb[70].mxu1  ;;  %2097 = vmatpush3.bf16.msra.mxu0 %v2096_v9 }
 0x1ff   :  { %v2023_v33 = vpop.f32.mrb[71].mxu1  ;;  %2098 = vmatprep.subr.bf16.mxu0 %v2257_v34  ;;  %v1433_v34 = vmul.f32 %v2745_v54, %v2745_v54 }
 0x200   :  { %v1332_v58 = vadd.f32 %v2021_v30, %v1235_v45  ;;  %v2024_v10 = vadd.f32 %v2023_v33, %v2022_v55 }
 0x201   :  { %v1434_v27 = vsel %vm1409_vm4, %v1433_v34, 0.0 }
 0x202   :  { %v1335_v18 = vadd.f32 %v2024_v10, %v1238_v50  ;;  %v1435_v31 = vsel %vm1411_vm5, %v1434_v27, 0.0 }
 0x204   :  { %v2099_v21 = vpack.c.bf16 %v1335_v18, %v1332_v58 }
 0x206   :  { %2100 = vmatpush3.bf16.msra.mxu0 %v2099_v21 }
 0x209   :  { %2075 = vmatmul.mubr.f32.vlgmr.msra.gmra.mrb[72].mxu0 %v2650_v35 }
 0x26b   :  { %v1425_v13 = vpop.xlane.xlu0 %1424 }
 0x26c   :  { %v1426_v16 = vrot.slane %v1425_v13, 4 }
 0x2dc   :  { %v1557_v61 = vpop.f32.mrb[72].mxu0 }
 0x2dd   :  { %v1561_v24 = vmul.f32 %v1557_v61, %v2650_v35  ;;  %v2076_v2 = vpop.f32.mrb[73].mxu0  ;;  %v1427_v35 = vadd.f32 %v1426_v16, %v1425_v13 }
 0x2df   :  { %1562 = vadd.xlane.f32.xlu1 %v1561_v24  ;;  %v1428_v54 = vrot.slane %v1427_v35, 2 }
 0x2e1   :  { %v1429_v47 = vadd.f32 %v1428_v54, %v1427_v35 }
 0x2e3   :  { %1413 = vadd.xlane.f32.xlu1 %v1412_v26  ;;  %v1430_v51 = vrot.slane %v1429_v47, 1 }
 0x2e5   :  { %v1431_v40 = vadd.f32 %v1430_v51, %v1429_v47 }
 0x2e7   :  { %1436 = vadd.xlane.f32.xlu1 %v1435_v31 }
 0x36c   :  { %v1563_v56 = vpop.xlane.xlu1 %1562 }
 0x36d   :  { %v1564_v43 = vmax.f32 %v1563_v56, 0.0 }
 0x36f   :  { %2187 = vrsqrt.f32 %v1564_v43  ;;  %vm1567_vm6 = vcmp.eq.f32.partialorder %v1564_v43, inf  ;;  %v1570_v62 = vand.u32 2147483648, %v1564_v43  ;;  %vm1569_vm7 = vcmp.eq.f32.partialorder %v1564_v43, 0.0 }
 0x370   :  { %v1414_v5 = vpop.xlane.xlu1 %1413 }
 0x371   :  { %v1415_v44 = vrot.slane %v1414_v5, 4 }
 0x373   :  { %v1416_v4 = vadd.f32 %v1415_v44, %v1414_v5 }
 0x374   :  { %v1437_v45 = vpop.xlane.xlu1 %1436 }
 0x375   :  { %v1417_v11 = vrot.slane %v1416_v4, 2  ;;  %v1438_v48 = vrot.slane %v1437_v45, 4 }
 0x377   :  { %v1439_v49 = vadd.f32 %v1438_v48, %v1437_v45  ;;  %v1418_v50 = vadd.f32 %v1417_v11, %v1416_v4 }
 0x379   :  { %v2188_v53 = vpop.eup %2187  ;;  %v1440_v23 = vrot.slane %v1439_v49, 2  ;;  %v1419_v57 = vrot.slane %v1418_v50, 1 }
 0x37a   :  { %v1566_v29 = vmul.f32 %v2188_v53, %v1564_v43 }
 0x37b   :  { %v1441_v60 = vadd.f32 %v1440_v23, %v1439_v49  ;;  %v1420_v59 = vadd.f32 %v1419_v57, %v1418_v50 }
 0x37c   :  { %v1568_v20 = vsel %vm1567_vm6, %v1564_v43, %v1566_v29 }
 0x37d   :  { %2101 = vpush %v1420_v59  ;;  %v1442_v28 = vrot.slane %v1441_v60, 1  ;;  %v1571_v63 = vsel %vm1569_vm7, %v1570_v62, %v1568_v20 }
 0x37e   :  { %2103 = vpush %v1431_v40  ;;  %v1680_v19 = vadd.f32 -1.0, %v1571_v63 }
 0x37f   :  { %v1443_v0 = vadd.f32 %v1442_v28, %v1441_v60 }
 0x380   :  { %v1573_v37 = vmul.f32 %v1680_v19, %v1680_v19 }
 0x381   :  { %2105 = vpush %v1443_v0 }
 0x382   :  { %v1574_v22 = vsel %vm1409_vm4, %v1573_v37, 0.0 }
 0x383   :  { %v1575_v32 = vsel %vm1411_vm5, %v1574_v22, 0.0 }
 0x384   :  { %1576 = vadd.xlane.f32.xlu0 %v1575_v32 }
 0x3ae   :  { %s2102_s5 = spop %2101 }
 0x3af   :  { %s2104_s8 = spop %2103 }
 0x3b0   :  { %s1445_s9 = ssub.f32 %s2102_s5, %s2104_s8 }
 0x3b2   :  { %s1448_s10 = smul.f32 0.5, %s1445_s9  ;;  %s2106_s11 = spop %2105 }
 0x3b3   :  { %s1453_s12 = smul.f32 0.5, %s2106_s11 }
 0x3b4   :  { %1450 = sst [smem:[#allocation10]] %s1448_s10 }
 0x3b5   :  { %s1454_s13 = smul.f32 0.001, %s1453_s12 }
 0x3b7   :  { %1456 = sst [smem:[#allocation10 + $0x2]] %s1454_s13 }
 0x411   :  { %v1577_v39 = vpop.xlane.xlu0 %1576 }
 0x412   :  { %v1578_v41 = vrot.slane %v1577_v39, 4 }
 0x414   :  { %v1579_v14 = vadd.f32 %v1578_v41, %v1577_v39 }
 0x416   :  { %v1580_v1 = vrot.slane %v1579_v14, 2 }
 0x418   :  { %v1581_v46 = vadd.f32 %v1580_v1, %v1579_v14 }
 0x41a   :  { %v1582_v3 = vrot.slane %v1581_v46, 1 }
 0x41c   :  { %v1583_v15 = vadd.f32 %v1582_v3, %v1581_v46 }
 0x41e   :  { %2107 = vpush %v1583_v15 }
 0x44f   :  { %s2108_s14 = spop %2107 }
 0x450   :  { %s1587_s15 = smul.f32 0.5, %s2108_s14 }
 0x452   :  { %s1588_s16 = smul.f32 10.0, %s1587_s15 }
 0x454   :  { %1590 = sst [smem:[#allocation10 + $0x1]] %s1588_s16 }
 0x455   :  { %2242 = shalt.err (!%p2239_p4)
}
 0x456   :  { %s2260_s23 = smov [#allocation10]  }
 0x457   :  { %1598 = dma.smem_to_hbm %s2260_s23, 16, %s2800_s6, [#allocation7]  }
 0x458   :  { %2247 = dma.done.wait [#allocation7], 16  }
 0x459   :  { %2248 = vsyncadd [#allocation7], 4294967280 }
 0x45a   :  { %1602 = sfence }
 0x45b   :  { %1603 = vsyncpa [#allocation6], 1 }
 0x45c   :  { %1604 = vsyncpa [#allocation9], 1 }
 0x45d   :  { %1605 = vsyncpa [#allocation7], 1 }

</bundles_post_ra>
